<compile_context>
chip_gen: v5e
topology: v5e:2x2
jax: 0.10.0
libtpu: 0.0.40
codegen_flags: <defaults>
</compile_context>

<pallas_src>
import jax
import jax.numpy as jnp
from jax.experimental import pallas as pl
from jax.experimental.pallas import tpu as pltpu


def _cosine_smearing_kernel(angle_ref, freq_ref, out_ref):
    # angle_ref: (TM, 1) tile of angles
    # freq_ref:  (1, G)  full frequency row (broadcast along rows)
    # out_ref:   (TM, G)
    a = angle_ref[...]                 # (TM, 1)
    f = freq_ref[...]                  # (1, G)
    out_ref[...] = jnp.cos(a * f)      # (TM, G) via broadcasting


def _round_up(x, m):
    return ((x + m - 1) // m) * m


def symmetric_cosine_smearing(angle, freq_k, *, tile_m=1024):
    """angle: any shape (flattened like torch .view(-1, 1)); freq_k: (G,)."""
    angle_flat = jnp.reshape(angle, (-1, 1)).astype(jnp.float32)
    n = angle_flat.shape[0]
    g = freq_k.shape[0]

    # Pick a large row tile (multiple of 8 sublanes), clamped to the problem size.
    tile = min(_round_up(tile_m, 8), _round_up(n, 8))
    n_pad = _round_up(n, tile)
    if n_pad != n:
        angle_flat = jnp.pad(angle_flat, ((0, n_pad - n), (0, 0)))

    freq_2d = jnp.reshape(freq_k, (1, g)).astype(jnp.float32)

    cost = pl.CostEstimate(
        flops=2 * n_pad * g,            # mul + (cos counted under transcendentals)
        transcendentals=n_pad * g,
        bytes_accessed=4 * (n_pad + g + n_pad * g),
    )

    out = pl.pallas_call(
        _cosine_smearing_kernel,
        out_shape=jax.ShapeDtypeStruct((n_pad, g), jnp.float32),
        grid_spec=pltpu.PrefetchScalarGridSpec(
            num_scalar_prefetch=0,
            grid=(n_pad // tile,),
            in_specs=[
                pl.BlockSpec((tile, 1), lambda i: (i, 0)),   # angle tile
                pl.BlockSpec((1, g), lambda i: (0, 0)),      # full freq row
            ],
            out_specs=pl.BlockSpec((tile, g), lambda i: (i, 0)),
        ),
        compiler_params=pltpu.CompilerParams(
            dimension_semantics=("parallel",),
        ),
        cost_estimate=cost,
    )(angle_flat, freq_2d)

    if n_pad != n:
        out = out[:n]
    return out


def make_freq_k(num_basis=50):
    # torch.arange(1, num_basis + 1).float()
    return jnp.arange(1, num_basis + 1, dtype=jnp.float32)


def reference_symmetric_cosine_smearing(angle, freq_k):
    return jnp.cos(jnp.reshape(angle, (-1, 1)) * jnp.reshape(freq_k, (1, -1)))


if __name__ == "__main__":
    key = jax.random.PRNGKey(0)
    num_basis = 50
    freq_k = make_freq_k(num_basis)

    # Case 1: small, tile-aligned number of angles (like bond angles in a molecular graph).
    n_angles = 64
    k1, k2 = jax.random.split(key)
    angle = jax.random.uniform(k1, (n_angles,), dtype=jnp.float32,
                               minval=0.0, maxval=jnp.pi)

    out = symmetric_cosine_smearing(angle, freq_k)
    out = jax.block_until_ready(out)
    ref = reference_symmetric_cosine_smearing(angle, freq_k)
    assert out.shape == (n_angles, num_basis), out.shape
    assert jnp.allclose(out, ref, atol=1e-6, rtol=1e-6), "mismatch vs reference (case 1)"

    # Case 2: non-multiple-of-8 row count to exercise the pad / slice path.
    n_angles2 = 37
    angle2 = jax.random.uniform(k2, (n_angles2,), dtype=jnp.float32,
                                minval=0.0, maxval=jnp.pi)
    out2 = jax.block_until_ready(symmetric_cosine_smearing(angle2, freq_k))
    ref2 = reference_symmetric_cosine_smearing(angle2, freq_k)
    assert out2.shape == (n_angles2, num_basis), out2.shape
    assert jnp.allclose(out2, ref2, atol=1e-6, rtol=1e-6), "mismatch vs reference (case 2)"

    print("KERNEL_OK")
</pallas_src>

<mosaic_0001>
module attributes {stable_mosaic.version = 11 : i64} {
  func.func @_cosine_smearing_kernel(%arg0: i32, %arg1: memref<64x1xf32, #tpu.memory_space<vmem>>, %arg2: memref<1x50xf32, #tpu.memory_space<vmem>>, %arg3: memref<64x50xf32, #tpu.memory_space<vmem>>) attributes {dimension_semantics = [#tpu.dimension_semantics<parallel>], iteration_bounds = array<i64: 1>, scalar_prefetch = 0 : i64, scratch_operands = 0 : i64, tpu.core_type = #tpu.core_type<tc>, window_params = [{transform_indices = @transform_0, window_bounds = array<i64: 64, 1>}, {pipeline_mode = #tpu.pipeline_mode<synchronous>, transform_indices = @transform_1, window_bounds = array<i64: 1, 50>}, {transform_indices = @transform_2, window_bounds = array<i64: 64, 50>}]} {
    %c0 = arith.constant 0 : index
    %c0_0 = arith.constant 0 : index
    %0 = vector.load %arg1[%c0, %c0_0] : memref<64x1xf32, #tpu.memory_space<vmem>>, vector<64x1xf32>
    %c0_1 = arith.constant 0 : index
    %c0_2 = arith.constant 0 : index
    %1 = vector.load %arg2[%c0_1, %c0_2] : memref<1x50xf32, #tpu.memory_space<vmem>>, vector<1x50xf32>
    %2 = vector.broadcast %0 : vector<64x1xf32> to vector<64x50xf32>
    %3 = vector.broadcast %1 : vector<1x50xf32> to vector<64x50xf32>
    %4 = arith.mulf %2, %3 : vector<64x50xf32>
    %5 = math.cos %4 : vector<64x50xf32>
    %c0_3 = arith.constant 0 : index
    %c0_4 = arith.constant 0 : index
    %6 = vector.load %arg3[%c0_3, %c0_4] : memref<64x50xf32, #tpu.memory_space<vmem>>, vector<64x50xf32>
    tpu.vector_store %arg3[%c0_3, %c0_4], %5 {strides = array<i32>} : memref<64x50xf32, #tpu.memory_space<vmem>>, vector<64x50xf32>,
    return
  }
  func.func @transform_0(%arg0: i32) -> (i32, i32) {
    %c0_i32 = arith.constant 0 : i32
    %c0_i32_0 = arith.constant 0 : i32
    return %arg0, %c0_i32 : i32, i32
  }
  func.func @transform_1(%arg0: i32) -> (i32, i32) {
    %c0_i32 = arith.constant 0 : i32
    %c0_i32_0 = arith.constant 0 : i32
    %c0_i32_1 = arith.constant 0 : i32
    return %c0_i32, %c0_i32_0 : i32, i32
  }
  func.func @transform_2(%arg0: i32) -> (i32, i32) {
    %c0_i32 = arith.constant 0 : i32
    %c0_i32_0 = arith.constant 0 : i32
    return %arg0, %c0_i32 : i32, i32
  }
}

</mosaic_0001>

<bundles_post_ra>
// kernel: tpu_custom_call.1
= control target key start
LH: loop header
LB: loop body
LE: loop exit
PB: predicated region body
PF: predicated region fallthrough
CT: control target
= control target key end

     0   :  { %v1352_v0 = vmov 0   ;;  %v1353_v33 = vmov 683565275   ;;  %v1354_v35 = vmov 2475754826   ;;  %s2507_s0 = inlined_call_operand.vmem [shape: f32[64,1], index: 0, kind: input, shape index: {}]   ;;  %s2508_s1 = inlined_call_operand.vmem [shape: f32[1,50], index: 1, kind: input, shape index: {}]   ;;  %s2509_s2 = inlined_call_operand.vmem [shape: f32[64,50], index: 2, kind: output, shape index: {}]  }
   0x1   :  { %1349 = vset.pattern.permute.xlu2 %v1352_v0  ;;  %1348 = vset.pattern.permute.xlu1 %v1352_v0  ;;  %v15_v1 = vld [vmem:[%s2507_s0 + $0x20] sm:$0xff]  ;;  %v13_v2 = vld [vmem:[%s2507_s0 + $0x10] sm:$0xff]  ;;  %v16_v4 = vld [vmem:[%s2507_s0 + $0x28] sm:$0xff]  ;;  %v2518_v39 = vmov 2131351028  }
   0x2   :  { %v11_v3 = vld [vmem:[%s2507_s0] sm:$0xff]  ;;  %1347 = vset.pattern.permute.xlu0 %v1352_v0  ;;  %42 = vperm.xlu2 %1349, %v15_v1   ;;  %v14_v5 = vld [vmem:[%s2507_s0 + $0x18] sm:$0xff]  ;;  %v12_v6 = vld [vmem:[%s2507_s0 + $0x8] sm:$0xff]  ;;  %v2516_v41 = vmov 2102212464  }
   0x3   :  { %32 = vperm.xlu1 %1348, %v13_v2   ;;  %22 = vperm.xlu0 %1347, %v11_v3   ;;  %v18_v7 = vld [vmem:[%s2507_s0 + $0x38] sm:$0xff]  ;;  %v17_v8 = vld [vmem:[%s2507_s0 + $0x30] sm:$0xff]  ;;  %v1404_v9 = vld [vmem:[%s2508_s1] ss:$0 sm:$0xff]  ;;  %v2514_v43 = vmov 920167782  }
   0x4   :  { %v2511_v48 = vmov 1326507024  }
   0xa   :  { %47 = vperm.xlu2 %1349, %v16_v4  }
   0xb   :  { %37 = vperm.xlu1 %1348, %v14_v5   ;;  %27 = vperm.xlu0 %1347, %v12_v6  }
  0x13   :  { %57 = vperm.xlu1 %1348, %v18_v7   ;;  %52 = vperm.xlu0 %1347, %v17_v8  }
  0x75   :  { %v23_v10 = vpop.permute.xlu0 %22  ;;  %v33_v11 = vpop.permute.xlu1 %32 }
  0x76   :  { %v1407_v12 = vmul.f32 %v1404_v9, %v23_v10  ;;  %v1412_v15 = vmul.f32 %v1404_v9, %v33_v11 }
  0x78   :  { %v71_v13 = vand.u32 2147483647, %v1407_v12  ;;  %v74_v14 = vand.u32 2139095040, %v1407_v12  ;;  %v382_v20 = vand.u32 2139095040, %v1412_v15 }
  0x7a   :  { %v75_v16 = vshrl.u32 %v74_v14, 23  ;;  %v78_v18 = vand.u32 8388607, %v71_v13  ;;  %v383_v26 = vshrl.u32 %v382_v20, 23 }
  0x7c   :  { %v1316_v17 = vadd.s32 4294967169, %v75_v16  ;;  %v79_v23 = vor.u32 8388608, %v78_v18  ;;  %v1428_v37 = vadd.s32 4294967169, %v383_v26 }
  0x7d   :  { %v28_v19 = vpop.permute.xlu0 %27 }
  0x7e   :  { %v1418_v21 = vmul.f32 %v1404_v9, %v28_v19  ;;  %v81_v22 = vadd.s32 1, %v1316_v17  ;;  %v1421_v29 = vshll.u32 %v79_v23, 8 }
  0x80   :  { %vm82_vm0 = vcmp.gt.s32.totalorder %v81_v22, 0  ;;  %v228_v25 = vand.u32 2139095040, %v1418_v21  ;;  %v225_v30 = vand.u32 2147483647, %v1418_v21  ;;  %v120_v51 = vand.u32 65535, %v1421_v29 }
  0x81   :  { %v83_v24 = vsel %vm82_vm0, %v81_v22, 0  ;;  %v121_v7 = vshrl.u32 %v1421_v29, 16 }
  0x82   :  { %v85_v27 = vand.u32 31, %v83_v24  ;;  %v229_v31 = vshrl.u32 %v228_v25, 23  ;;  %v1424_v32 = vshrl.u32 %v83_v24, 5  ;;  %v1441_v53 = vand.u32 8388607, %v225_v30 }
  0x84   :  { %v86_v28 = vsub.s32 32, %v85_v27  ;;  %v88_v34 = vshll.u32 %v1353_v33, %v85_v27  ;;  %v91_v36 = vshll.u32 %v1354_v35, %v85_v27  ;;  %v94_v40 = vshll.u32 %v2518_v39, %v85_v27 }
  0x85   :  { %v97_v42 = vshll.u32 %v2516_v41, %v85_v27  ;;  %v100_v44 = vshll.u32 %v2514_v43, %v85_v27  ;;  %v1319_v52 = vadd.s32 4294967169, %v229_v31  ;;  %vm103_vm1 = vcmp.lt.s32.totalorder %v1424_v32, 1 }
  0x86   :  { %v89_v38 = vshrl.u32 %v1354_v35, %v86_v28  ;;  %v92_v45 = vshrl.u32 %v2518_v39, %v86_v28  ;;  %v95_v46 = vshrl.u32 %v2516_v41, %v86_v28  ;;  %v98_v47 = vshrl.u32 %v2514_v43, %v86_v28 }
  0x87   :  { %v101_v49 = vshrl.u32 %v2511_v48, %v86_v28  ;;  %vm104_vm2 = vcmp.lt.s32.totalorder %v1424_v32, 2  ;;  %vm106_vm3 = vcmp.lt.s32.totalorder %v1424_v32, 4  ;;  %v235_v58 = vadd.s32 1, %v1319_v52 }
  0x88   :  { %v90_v50 = vor.u32 %v89_v38, %v88_v34  ;;  %v93_v54 = vor.u32 %v92_v45, %v91_v36  ;;  %v96_v55 = vor.u32 %v95_v46, %v94_v40  ;;  %v99_v56 = vor.u32 %v98_v47, %v97_v42 }
  0x89   :  { %v102_v57 = vor.u32 %v101_v49, %v100_v44  ;;  %vm105_vm4 = vcmp.lt.s32.totalorder %v1424_v32, 3  ;;  %v87_v62 = vshrl.u32 %v1353_v33, %v86_v28  ;;  %vm236_vm5 = vcmp.gt.s32.totalorder %v235_v58, 0 }
  0x8a   :  { %v111_v59 = vsel %vm103_vm1, %v90_v50, %v93_v54  ;;  %v112_v60 = vsel %vm106_vm3, %v99_v56, 920167782  ;;  %v115_v61 = vsel %vm103_vm1, %v93_v54, %v96_v55  ;;  %v108_v2 = vsel %vm106_vm3, %v96_v55, 2102212464 }
  0x8b   :  { %v113_v63 = vsel %vm105_vm4, %v96_v55, %v112_v60  ;;  %v116_v1 = vsel %vm106_vm3, %v102_v57, 1326507024  ;;  %v237_v5 = vsel %vm236_vm5, %v235_v58, 0  ;;  %v107_v11 = vsel %vm103_vm1, %v87_v62, %v90_v50 }
  0x8c   :  { %v114_v3 = vsel %vm104_vm2, %v111_v59, %v113_v63  ;;  %v117_v4 = vsel %vm105_vm4, %v99_v56, %v116_v1  ;;  %v233_v17 = vor.u32 8388608, %v1441_v53  ;;  %v109_v18 = vsel %vm105_vm4, %v93_v54, %v108_v2 }
  0x8d   :  { %v118_v6 = vsel %vm104_vm2, %v115_v61, %v117_v4  ;;  %v144_v8 = vand.u32 65535, %v114_v3  ;;  %v145_v10 = vshrl.u32 %v114_v3, 16  ;;  %v239_v22 = vand.u32 31, %v237_v5 }
  0x8e   :  { %v122_v14 = vand.u32 65535, %v118_v6  ;;  %v123_v16 = vshrl.u32 %v118_v6, 16  ;;  %v1466_v26 = vshrl.u32 %v237_v5, 5 }
  0x8f   :  { %v147_v19 = vmul.u32 %v145_v10, %v120_v51  ;;  %v148_v20 = vmul.u32 %v144_v8, %v121_v7  ;;  %v146_v25 = vmul.u32 %v144_v8, %v120_v51  ;;  %v149_v31 = vmul.u32 %v145_v10, %v121_v7 }
  0x90   :  { %v125_v23 = vmul.u32 %v123_v16, %v120_v51  ;;  %v126_v24 = vmul.u32 %v122_v14, %v121_v7  ;;  %v124_v27 = vmul.u32 %v122_v14, %v120_v51  ;;  %v127_v28 = vmul.u32 %v123_v16, %v121_v7 }
  0x91   :  { %v150_v34 = vshll.u32 %v147_v19, 16  ;;  %v151_v38 = vshrl.u32 %v147_v19, 16  ;;  %v152_v40 = vshll.u32 %v148_v20, 16  ;;  %v153_v42 = vshrl.u32 %v148_v20, 16 }
  0x92   :  { %v128_v36 = vshll.u32 %v125_v23, 16  ;;  %v129_v44 = vshrl.u32 %v125_v23, 16  ;;  %v1468_v46 = vsub.s32 32, %v239_v22  ;;  %v130_v47 = vshll.u32 %v126_v24, 16 }
  0x93   :  { %vm154_vm6 = vc.u32 %v146_v25, %v150_v34  ;;  %v156_v45 = vadd.s32 %v150_v34, %v146_v25  ;;  %v242_v54 = vshll.u32 %v1353_v33, %v239_v22  ;;  %v245_v57 = vshll.u32 %v1354_v35, %v239_v22 }
  0x94   :  { %vm132_vm7 = vc.u32 %v124_v27, %v128_v36  ;;  %v134_v49 = vadd.s32 %v128_v36, %v124_v27  ;;  %v155_v50 = vsel %vm154_vm6, 1, %v1352_v0  ;;  %v243_v60 = vshrl.u32 %v1354_v35, %v1468_v46 }
  0x95   :  { %v133_v52 = vsel %vm132_vm7, 1, %v1352_v0  ;;  %v157_v51 = vadd.s32 %v155_v50, %v149_v31  ;;  %vm158_vm8 = vc.u32 %v156_v45, %v152_v40  ;;  %v246_v61 = vshrl.u32 %v2518_v39, %v1468_v46 }
  0x96   :  { %v135_v55 = vadd.s32 %v133_v52, %v127_v28  ;;  %vm136_vm9 = vc.u32 %v134_v49, %v130_v47  ;;  %v159_v56 = vsel %vm158_vm8, 1, %v1352_v0  ;;  %v248_v63 = vshll.u32 %v2518_v39, %v239_v22 }
  0x97   :  { %v137_v58 = vsel %vm136_vm9, 1, %v1352_v0  ;;  %v161_v59 = vadd.s32 %v159_v56, %v157_v51  ;;  %v249_v1 = vshrl.u32 %v2516_v41, %v1468_v46  ;;  %v251_v2 = vshll.u32 %v2516_v41, %v239_v22 }
  0x98   :  { %v139_v62 = vadd.s32 %v137_v58, %v135_v55  ;;  %v1484_v4 = vor.u32 %v243_v60, %v242_v54  ;;  %v1486_v5 = vor.u32 %v246_v61, %v245_v57  ;;  %v252_v6 = vshrl.u32 %v2514_v43, %v1468_v46 }
  0x99   :  { %v162_v3 = vadd.s32 %v161_v59, %v151_v38  ;;  %v131_v7 = vshrl.u32 %v126_v24, 16  ;;  %v254_v10 = vshll.u32 %v2514_v43, %v239_v22  ;;  %v255_v14 = vshrl.u32 %v2511_v48, %v1468_v46 }
  0x9a   :  { %v140_v8 = vadd.s32 %v139_v62, %v129_v44  ;;  %v110_v16 = vsel %vm104_vm2, %v107_v11, %v109_v18  ;;  %v1495_v20 = vor.u32 %v249_v1, %v248_v63  ;;  %v253_v23 = vor.u32 %v252_v6, %v251_v2 }
  0x9b   :  { %v163_v19 = vadd.s32 %v162_v3, %v153_v42  ;;  %v1499_v27 = vadd.s32 %v156_v45, %v152_v40  ;;  %v256_v28 = vor.u32 %v255_v14, %v254_v10  ;;  %vm257_vm10 = vcmp.lt.s32.totalorder %v1466_v26, 1 }
  0x9c   :  { %v1497_v25 = vadd.s32 %v140_v8, %v131_v7  ;;  %vm260_vm11 = vcmp.lt.s32.totalorder %v1466_v26, 4  ;;  %v265_v32 = vsel %vm257_vm10, %v1484_v4, %v1486_v5  ;;  %v389_v11 = vadd.s32 1, %v1428_v37 }
  0x9d   :  { %v167_v24 = vadd.s32 1, %v163_v19  ;;  %v164_v18 = vmul.u32 %v1421_v29, %v110_v16  ;;  %vm259_vm13 = vcmp.lt.s32.totalorder %v1466_v26, 3  ;;  %v266_v22 = vsel %vm260_vm11, %v253_v23, 920167782 }
  0x9e   :  { %vm166_vm12 = vc.u32 %v1497_v25, %v1499_v27  ;;  %vm258_vm14 = vcmp.lt.s32.totalorder %v1466_v26, 2  ;;  %v267_v34 = vsel %vm259_vm13, %v1495_v20, %v266_v22  ;;  %v269_v29 = vsel %vm257_vm10, %v1486_v5, %v1495_v20 }
  0x9f   :  { %v168_v31 = vsel %vm166_vm12, %v167_v24, %v163_v19  ;;  %v268_v36 = vsel %vm258_vm14, %v265_v32, %v267_v34  ;;  %v270_v38 = vsel %vm260_vm11, %v256_v28, 1326507024  ;;  %v1528_v40 = vshll.u32 %v233_v17, 8 }
  0xa0   :  { %v169_v37 = vadd.s32 %v168_v31, %v164_v18  ;;  %v271_v42 = vsel %vm259_vm13, %v253_v23, %v270_v38  ;;  %v299_v44 = vshrl.u32 %v268_v36, 16  ;;  %vm390_vm15 = vcmp.gt.s32.totalorder %v389_v11, 0 }
  0xa1   :  { %v272_v47 = vsel %vm258_vm14, %v269_v29, %v271_v42  ;;  %v274_v49 = vand.u32 65535, %v1528_v40  ;;  %v298_v50 = vand.u32 65535, %v268_v36  ;;  %v275_v52 = vshrl.u32 %v1528_v40, 16 }
  0xa2   :  { %v170_v45 = vadd.s32 536870912, %v169_v37  ;;  %v276_v51 = vand.u32 65535, %v272_v47  ;;  %v277_v54 = vshrl.u32 %v272_v47, 16  ;;  %v391_v57 = vsel %vm390_vm15, %v389_v11, 0 }
  0xa3   :  { %v301_v53 = vmul.u32 %v299_v44, %v274_v49  ;;  %v302_v59 = vmul.u32 %v298_v50, %v275_v52  ;;  %v300_v1 = vmul.u32 %v298_v50, %v274_v49  ;;  %v393_v2 = vand.u32 31, %v391_v57 }
  0xa4   :  { %v1536_v55 = vshrl.u32 %v170_v45, 30  ;;  %v279_v17 = vmul.u32 %v277_v54, %v274_v49  ;;  %v280_v56 = vmul.u32 %v276_v51, %v275_v52  ;;  %v278_v60 = vmul.u32 %v276_v51, %v274_v49 }
  0xa5   :  { %v304_v62 = vshll.u32 %v301_v53, 16  ;;  %v281_v3 = vmul.u32 %v277_v54, %v275_v52  ;;  %v306_v14 = vshll.u32 %v302_v59, 16  ;;  %v303_v28 = vmul.u32 %v299_v44, %v275_v52 }
  0xa6   :  { %v172_v58 = vshll.u32 %v1536_v55, 30  ;;  %v282_v61 = vshll.u32 %v279_v17, 16  ;;  %v284_v6 = vshll.u32 %v280_v56, 16  ;;  %v379_v24 = vand.u32 2147483647, %v1412_v15 }
  0xa7   :  { %vm308_vm3 = vc.u32 %v300_v1, %v304_v62  ;;  %v310_v19 = vadd.s32 %v304_v62, %v300_v1  ;;  %v283_v32 = vshrl.u32 %v279_v17, 16  ;;  %v1551_v36 = vsub.s32 32, %v393_v2 }
  0xa8   :  { %v1539_v63 = vsub.s32 %v169_v37, %v172_v58  ;;  %vm286_vm0 = vc.u32 %v278_v60, %v282_v61  ;;  %v288_v7 = vadd.s32 %v282_v61, %v278_v60  ;;  %v309_v18 = vsel %vm308_vm3, 1, %v1352_v0 }
  0xa9   :  { %v287_v10 = vsel %vm286_vm0, 1, %v1352_v0  ;;  %vm312_vm4 = vc.u32 %v310_v19, %v306_v14  ;;  %v311_v34 = vadd.s32 %v309_v18, %v303_v28  ;;  %v241_v37 = vshrl.u32 %v1353_v33, %v1468_v46 }
  0xaa   :  { %vm174_vm1 = vcmp.lt.s32.totalorder %v1539_v63, 0  ;;  %v175_v8 = vsub.s32 0, %v1539_v63  ;;  %v289_v16 = vadd.s32 %v287_v10, %v281_v3  ;;  %vm290_vm2 = vc.u32 %v288_v7, %v284_v6 }
  0xab   :  { %v291_v11 = vsel %vm290_vm2, 1, %v1352_v0  ;;  %v313_v29 = vsel %vm312_vm4, 1, %v1352_v0  ;;  %v262_v38 = vsel %vm260_vm11, %v1495_v20, 2102212464  ;;  %v305_v44 = vshrl.u32 %v301_v53, 16 }
  0xac   :  { %v176_v23 = vsel %vm174_vm1, %v175_v8, %v1539_v63  ;;  %v293_v31 = vadd.s32 %v291_v11, %v289_v16  ;;  %v315_v45 = vadd.s32 %v313_v29, %v311_v34  ;;  %v261_v47 = vsel %vm257_vm10, %v241_v37, %v1484_v4 }
  0xad   :  { %v177_v22 = vclz %v176_v23  ;;  %v285_v49 = vshrl.u32 %v280_v56, 16  ;;  %v386_v50 = vand.u32 8388607, %v379_v24  ;;  %v307_v51 = vshrl.u32 %v302_v59, 16 }
  0xae   :  { %v294_v42 = vadd.s32 %v293_v31, %v283_v32  ;;  %v316_v46 = vadd.s32 %v315_v45, %v305_v44  ;;  %v397_v54 = vshrl.u32 %v1354_v35, %v1551_v36  ;;  %v263_v20 = vsel %vm259_vm13, %v1486_v5, %v262_v38 }
  0xaf   :  { %v1317_v52 = vadd.s32 4294967294, %v177_v22  ;;  %v1566_v53 = vshrl.u32 %v391_v57, 5  ;;  %v400_v17 = vshrl.u32 %v2518_v39, %v1551_v36  ;;  %v403_v4 = vshrl.u32 %v2516_v41, %v1551_v36 }
  0xb0   :  { %v1572_v56 = vadd.s32 %v294_v42, %v285_v49  ;;  %v1574_v58 = vadd.s32 %v310_v19, %v306_v14  ;;  %v317_v59 = vadd.s32 %v316_v46, %v307_v51  ;;  %v396_v60 = vshll.u32 %v1353_v33, %v393_v2 }
  0xb1   :  { %v399_v61 = vshll.u32 %v1354_v35, %v393_v2  ;;  %v402_v62 = vshll.u32 %v2518_v39, %v393_v2  ;;  %v405_v5 = vshll.u32 %v2516_v41, %v393_v2  ;;  %v406_v57 = vshrl.u32 %v2514_v43, %v1551_v36 }
  0xb2   :  { %vm1318_vm5 = vcmp.lt.s32.totalorder %v1317_v52, 0  ;;  %v1582_v1 = vor.u32 %v397_v54, %v396_v60  ;;  %v408_v3 = vshll.u32 %v2514_v43, %v393_v2  ;;  %v409_v6 = vshrl.u32 %v2511_v48, %v1551_v36 }
  0xb3   :  { %v321_v7 = vadd.s32 1, %v317_v59  ;;  %v1587_v8 = vor.u32 %v400_v17, %v399_v61  ;;  %v1589_v10 = vor.u32 %v403_v4, %v402_v62  ;;  %v407_v14 = vor.u32 %v406_v57, %v405_v5 }
  0xb4   :  { %vm320_vm6 = vc.u32 %v1572_v56, %v1574_v58  ;;  %v387_v16 = vor.u32 8388608, %v386_v50  ;;  %v410_v19 = vor.u32 %v409_v6, %v408_v3  ;;  %v264_v23 = vsel %vm258_vm14, %v261_v47, %v263_v20 }
  0xb5   :  { %vm414_vm7 = vcmp.lt.s32.totalorder %v1566_v53, 4  ;;  %v180_v2 = vsel %vm1318_vm5, 0, %v1317_v52  ;;  %vm411_vm8 = vcmp.lt.s32.totalorder %v1566_v53, 1  ;;  %vm413_vm9 = vcmp.lt.s32.totalorder %v1566_v53, 3 }
  0xb6   :  { %v420_v28 = vsel %vm414_vm7, %v407_v14, 920167782  ;;  %v322_v32 = vsel %vm320_vm6, %v321_v7, %v317_v59  ;;  %v419_v11 = vsel %vm411_vm8, %v1582_v1, %v1587_v8  ;;  %v423_v18 = vsel %vm411_vm8, %v1587_v8, %v1589_v10 }
  0xb7   :  { %v421_v26 = vsel %vm413_vm9, %v1589_v10, %v420_v28  ;;  %v318_v22 = vmul.u32 %v1528_v40, %v264_v23  ;;  %v424_v31 = vsel %vm414_vm7, %v410_v19, 1326507024  ;;  %v1614_v34 = vshll.u32 %v387_v16, 8 }
  0xb8   :  { %v185_v29 = vsub.s32 4294967266, %v180_v2  ;;  %vm412_vm10 = vcmp.lt.s32.totalorder %v1566_v53, 2  ;;  %v425_v37 = vsel %vm413_vm9, %v407_v14, %v424_v31  ;;  %v181_v51 = vsub.s32 32, %v180_v2 }
  0xb9   :  { %v323_v38 = vadd.s32 %v322_v32, %v318_v22  ;;  %v422_v42 = vsel %vm412_vm10, %v419_v11, %v421_v26  ;;  %v426_v44 = vsel %vm412_vm10, %v423_v18, %v425_v37  ;;  %v428_v40 = vand.u32 65535, %v1614_v34  ;;  %v38_v22 = vpop.permute.xlu1 %37 }
  0xba   :  { %v430_v45 = vand.u32 65535, %v426_v44  ;;  %v431_v47 = vshrl.u32 %v426_v44, 16  ;;  %v186_v49 = vadd.s32 127, %v185_v29  ;;  %v429_v50 = vshrl.u32 %v1614_v34, 16 }
  0xbb   :  { %v453_v52 = vshrl.u32 %v422_v42, 16  ;;  %v324_v46 = vadd.s32 536870912, %v323_v38  ;;  %v165_v17 = vadd.s32 %v1499_v27, %v1497_v25  ;;  %v452_v57 = vand.u32 65535, %v422_v42 }
  0xbc   :  { %v433_v54 = vmul.u32 %v431_v47, %v428_v40  ;;  %v434_v20 = vmul.u32 %v430_v45, %v429_v50  ;;  %v187_v59 = vshll.u32 %v186_v49, 23  ;;  %v432_v60 = vmul.u32 %v430_v45, %v428_v40 }
  0xbd   :  { %v455_v61 = vmul.u32 %v453_v52, %v428_v40  ;;  %v183_v62 = vshrl.u32 %v165_v17, %v181_v51  ;;  %v1627_v5 = vshrl.u32 %v324_v46, 30  ;;  %v435_v3 = vmul.u32 %v431_v47, %v429_v50 }
  0xbe   :  { %v436_v4 = vshll.u32 %v433_v54, 16  ;;  %v438_v6 = vshll.u32 %v434_v20, 16  ;;  %v182_v14 = vshll.u32 %v1539_v63, %v180_v2  ;;  %v188_v19 = vor.u32 4788187, %v187_v59 }
  0xbf   :  { %v458_v25 = vshll.u32 %v455_v61, 16  ;;  %v326_v27 = vshll.u32 %v1627_v5, 30  ;;  %v456_v32 = vmul.u32 %v452_v57, %v429_v50  ;;  %v454_v18 = vmul.u32 %v452_v57, %v428_v40 }
  0xc0   :  { %vm440_vm11 = vc.u32 %v432_v60, %v436_v4  ;;  %v442_v7 = vadd.s32 %v436_v4, %v432_v60  ;;  %v184_v11 = vor.u32 %v183_v62, %v182_v14  ;;  %v189_v31 = vand.u32 2147483647, %v188_v19 }
  0xc1   :  { %v441_v16 = vsel %vm440_vm11, 1, %v1352_v0  ;;  %v437_v29 = vshrl.u32 %v433_v54, 16  ;;  %v457_v37 = vmul.u32 %v453_v52, %v429_v50  ;;  %vm462_vm13 = vc.u32 %v454_v18, %v458_v25 }
  0xc2   :  { %v443_v23 = vadd.s32 %v441_v16, %v435_v3  ;;  %vm444_vm12 = vc.u32 %v442_v7, %v438_v6  ;;  %v1633_v63 = vsub.s32 %v323_v38, %v326_v27  ;;  %v460_v2 = vshll.u32 %v456_v32, 16 }
  0xc3   :  { %v445_v28 = vsel %vm444_vm12, 1, %v1352_v0  ;;  %v463_v42 = vsel %vm462_vm13, 1, %v1352_v0  ;;  %v464_v44 = vadd.s32 %v458_v25, %v454_v18  ;;  %v191_v45 = vcvt.s32.f32 %v184_v11  ;;  %v43_v11 = vpop.permute.xlu2 %42 }
  0xc4   :  { %v447_v26 = vadd.s32 %v445_v28, %v443_v23  ;;  %v465_v49 = vadd.s32 %v463_v42, %v457_v37  ;;  %v1637_v51 = vmul.f32 %v1404_v9, %v38_v22  ;;  %v416_v40 = vsel %vm414_vm7, %v1589_v10, 2102212464 }
  0xc5   :  { %vm466_vm14 = vc.u32 %v464_v44, %v460_v2  ;;  %v192_v46 = vmul.f32 %v191_v45, %v189_v31  ;;  %v395_v38 = vshrl.u32 %v1353_v33, %v1551_v36  ;;  %v439_v50 = vshrl.u32 %v434_v20, 16 }
  0xc6   :  { %v448_v47 = vadd.s32 %v447_v26, %v437_v29  ;;  %v467_v52 = vsel %vm466_vm14, 1, %v1352_v0  ;;  %v329_v54 = vsub.s32 0, %v1633_v63  ;;  %v459_v17 = vshrl.u32 %v455_v61, 16 }
  0xc7   :  { %v469_v4 = vadd.s32 %v467_v52, %v465_v49  ;;  %vm328_vm15 = vcmp.lt.s32.totalorder %v1633_v63, 0  ;;  %v415_v59 = vsel %vm411_vm8, %v395_v38, %v1582_v1  ;;  %v417_v10 = vsel %vm413_vm9, %v1587_v8, %v416_v40 }
  0xc8   :  { %v1653_v60 = vadd.s32 %v448_v47, %v439_v50  ;;  %v461_v36 = vshrl.u32 %v456_v32, 16  ;;  %v193_v62 = vxor.u32 2147483648, %v192_v46  ;;  %v1655_v57 = vadd.s32 %v464_v44, %v460_v2 }
  0xc9   :  { %v470_v20 = vadd.s32 %v469_v4, %v459_v17  ;;  %v536_v61 = vand.u32 2139095040, %v1637_v51  ;;  %v330_v3 = vsel %vm328_vm15, %v329_v54, %v1633_v63  ;;  %v418_v6 = vsel %vm412_vm10, %v415_v59, %v417_v10 }
  0xca   :  { %vm474_vm0 = vc.u32 %v1653_v60, %v1655_v57  ;;  %vm73_vm1 = vcmp.lt.s32.totalorder %v1407_v12, 0  ;;  %v331_v16 = vclz %v330_v3  ;;  %v472_v19 = vmul.u32 %v1614_v34, %v418_v6 }
  0xcb   :  { %v471_v7 = vadd.s32 %v470_v20, %v461_v36  ;;  %v537_v1 = vshrl.u32 %v536_v61, 23  ;;  %v194_v14 = vsel %vm73_vm1, %v193_v62, %v192_v46  ;;  %vm1669_vm2 = vcmp.le.f32.partialorder %v71_v13, 0.7853982 }
  0xcc   :  { %v1676_v32 = vsel %vm1669_vm2, %v1407_v12, %v194_v14  ;;  %v1320_v26 = vadd.s32 4294967294, %v331_v16  ;;  %v1685_v29 = vmul.f32 %v1404_v9, %v43_v11  ;;  %v533_v2 = vand.u32 2147483647, %v1637_v51 }
  0xcd   :  { %v475_v8 = vadd.s32 1, %v471_v7  ;;  %v1325_v23 = vadd.s32 4294967169, %v537_v1  ;;  %v1680_v22 = vmul.f32 %v1676_v32, %v1676_v32  ;;  %v195_v11 = vsub.s32 4, %v1536_v55 }
  0xce   :  { %vm1321_vm4 = vcmp.lt.s32.totalorder %v1320_v26, 0  ;;  %v690_v49 = vand.u32 2139095040, %v1685_v29  ;;  %v540_v38 = vand.u32 8388607, %v533_v2 }
  0xcf   :  { %v476_v25 = vsel %vm474_vm0, %v475_v8, %v471_v7  ;;  %v543_v28 = vadd.s32 1, %v1325_v23  ;;  %v207_v42 = vmul.f32 -0.00019511016, %v1680_v22  ;;  %v334_v47 = vsel %vm1321_vm4, 0, %v1320_v26 }
  0xd0   :  { %v477_v27 = vadd.s32 %v476_v25, %v472_v19  ;;  %v200_v46 = vmul.f32 -0.001358992, %v1680_v22  ;;  %v339_v52 = vsub.s32 4294967266, %v334_v47  ;;  %v691_v36 = vshrl.u32 %v690_v49, 23 }
  0xd1   :  { %vm544_vm3 = vcmp.gt.s32.totalorder %v543_v28, 0  ;;  %v208_v50 = vadd.f32 0.008332121, %v207_v42  ;;  %v335_v6 = vsub.s32 32, %v334_v47  ;;  %v541_v7 = vor.u32 8388608, %v540_v38 }
  0xd2   :  { %v478_v18 = vadd.s32 536870912, %v477_v27  ;;  %v545_v34 = vsel %vm544_vm3, %v543_v28, 0  ;;  %v340_v25 = vadd.s32 127, %v339_v52  ;;  %v319_v26 = vadd.s32 %v1574_v58, %v1572_v56 }
  0xd3   :  { %v547_v31 = vand.u32 31, %v545_v34  ;;  %v1714_v1 = vshrl.u32 %v545_v34, 5  ;;  %v1328_v34 = vadd.s32 4294967169, %v691_v36  ;;  %v1729_v42 = vshll.u32 %v541_v7, 8 }
  0xd4   :  { %v1682_v13 = vshrl.u32 %v478_v18, 30  ;;  %v337_v49 = vshrl.u32 %v319_v26, %v335_v6  ;;  %v341_v58 = vshll.u32 %v340_v25, 23  ;;  %vm227_vm0 = vcmp.lt.s32.totalorder %v1418_v21, 0 }
  0xd5   :  { %v1692_v45 = vsub.s32 32, %v547_v31  ;;  %v550_v4 = vshll.u32 %v1353_v33, %v547_v31  ;;  %v553_v59 = vshll.u32 %v1354_v35, %v547_v31  ;;  %v559_v62 = vshll.u32 %v2516_v41, %v547_v31 }
  0xd6   :  { %v480_v37 = vshll.u32 %v1682_v13, 30  ;;  %v556_v8 = vshll.u32 %v2518_v39, %v547_v31  ;;  %v562_v23 = vshll.u32 %v2514_v43, %v547_v31  ;;  %vm565_vm6 = vcmp.lt.s32.totalorder %v1714_v1, 1 }
  0xd7   :  { %v551_v54 = vshrl.u32 %v1354_v35, %v1692_v45  ;;  %v554_v17 = vshrl.u32 %v2518_v39, %v1692_v45  ;;  %v557_v10 = vshrl.u32 %v2516_v41, %v1692_v45  ;;  %v560_v61 = vshrl.u32 %v2514_v43, %v1692_v45 }
  0xd8   :  { %v1690_v44 = vsub.s32 %v477_v27, %v480_v37  ;;  %v563_v3 = vshrl.u32 %v2511_v48, %v1692_v45  ;;  %v1725_v37 = vadd.f32 0.041655596, %v200_v46  ;;  %vm568_vm7 = vcmp.lt.s32.totalorder %v1714_v1, 4 }
  0xd9   :  { %v1717_v14 = vor.u32 %v551_v54, %v550_v4  ;;  %v1719_v16 = vor.u32 %v554_v17, %v553_v59  ;;  %v561_v19 = vor.u32 %v560_v61, %v559_v62  ;;  %v558_v28 = vor.u32 %v557_v10, %v556_v8 }
  0xda   :  { %v483_v40 = vsub.s32 0, %v1690_v44  ;;  %vm482_vm5 = vcmp.lt.s32.totalorder %v1690_v44, 0  ;;  %v564_v18 = vor.u32 %v563_v3, %v562_v23  ;;  %v1732_v31 = vmul.f32 %v208_v50, %v1680_v22 }
  0xdb   :  { %v574_v56 = vsel %vm568_vm7, %v561_v19, 920167782  ;;  %vm567_vm8 = vcmp.lt.s32.totalorder %v1714_v1, 3  ;;  %v577_v38 = vsel %vm565_vm6, %v1719_v16, %v558_v28  ;;  %vm566_vm9 = vcmp.lt.s32.totalorder %v1714_v1, 2 }
  0xdc   :  { %v484_v20 = vsel %vm482_vm5, %v483_v40, %v1690_v44  ;;  %v573_v40 = vsel %vm565_vm6, %v1717_v14, %v1719_v16  ;;  %v575_v50 = vsel %vm567_vm8, %v558_v28, %v574_v56  ;;  %v578_v52 = vsel %vm568_vm7, %v564_v18, 1326507024 }
  0xdd   :  { %v485_v27 = vclz %v484_v20  ;;  %v697_v54 = vadd.s32 1, %v1328_v34  ;;  %v336_v17 = vshll.u32 %v1633_v63, %v334_v47  ;;  %v576_v4 = vsel %vm566_vm9, %v573_v40, %v575_v50 }
  0xde   :  { %v579_v59 = vsel %vm567_vm8, %v561_v19, %v578_v52  ;;  %v582_v10 = vand.u32 65535, %v1729_v42  ;;  %v583_v20 = vshrl.u32 %v1729_v42, 16  ;;  %v606_v62 = vand.u32 65535, %v576_v4 }
  0xdf   :  { %v1323_v46 = vadd.s32 4294967294, %v485_v27  ;;  %v580_v36 = vsel %vm566_vm9, %v577_v38, %v579_v59  ;;  %v607_v61 = vshrl.u32 %v576_v4, 16  ;;  %v1758_v3 = vor.u32 %v337_v49, %v336_v17 }
  0xe0   :  { %v584_v6 = vand.u32 65535, %v580_v36  ;;  %v585_v63 = vshrl.u32 %v580_v36, 16  ;;  %v342_v47 = vor.u32 4788187, %v341_v58  ;;  %v610_v8 = vmul.u32 %v606_v62, %v583_v20 }
  0xe1   :  { %vm1324_vm10 = vcmp.lt.s32.totalorder %v1323_v46, 0  ;;  %v609_v7 = vmul.u32 %v607_v61, %v582_v10  ;;  %vm698_vm11 = vcmp.gt.s32.totalorder %v697_v54, 0  ;;  %v549_v19 = vshrl.u32 %v1353_v33, %v1692_v45 }
  0xe2   :  { %v587_v23 = vmul.u32 %v585_v63, %v582_v10  ;;  %v588_v25 = vmul.u32 %v584_v6, %v583_v20  ;;  %v687_v27 = vand.u32 2147483647, %v1685_v29  ;;  %v1763_v26 = vsel %vm1324_vm10, 0, %v1323_v46 }
  0xe3   :  { %v570_v18 = vsel %vm568_vm7, %v558_v28, 2102212464  ;;  %v608_v34 = vmul.u32 %v606_v62, %v582_v10  ;;  %v612_v49 = vshll.u32 %v609_v7, 16  ;;  %v586_v40 = vmul.u32 %v584_v6, %v582_v10 }
  0xe4   :  { %v590_v56 = vshll.u32 %v587_v23, 16  ;;  %v611_v58 = vmul.u32 %v607_v61, %v583_v20  ;;  %v699_v38 = vsel %vm698_vm11, %v697_v54, 0  ;;  %v589_v50 = vmul.u32 %v585_v63, %v583_v20 }
  0xe5   :  { %v614_v52 = vshll.u32 %v610_v8, 16  ;;  %vm616_vm12 = vc.u32 %v608_v34, %v612_v49  ;;  %v618_v17 = vadd.s32 %v612_v49, %v608_v34  ;;  %v592_v45 = vshll.u32 %v588_v25, 16 }
  0xe6   :  { %vm594_vm13 = vc.u32 %v586_v40, %v590_v56  ;;  %v596_v4 = vadd.s32 %v590_v56, %v586_v40  ;;  %v617_v59 = vsel %vm616_vm12, 1, %v1352_v0  ;;  %v569_v46 = vsel %vm565_vm6, %v549_v19, %v1717_v14 }
  0xe7   :  { %v595_v28 = vsel %vm594_vm13, 1, %v1352_v0  ;;  %v619_v36 = vadd.s32 %v617_v59, %v611_v58  ;;  %vm620_vm14 = vc.u32 %v618_v17, %v614_v52  ;;  %v571_v54 = vsel %vm567_vm8, %v1719_v16, %v570_v18 }
  0xe8   :  { %v597_v10 = vadd.s32 %v595_v28, %v589_v50  ;;  %vm598_vm15 = vc.u32 %v596_v4, %v592_v45  ;;  %v621_v20 = vsel %vm620_vm14, 1, %v1352_v0  ;;  %v613_v61 = vshrl.u32 %v609_v7, 16 }
  0xe9   :  { %v599_v62 = vsel %vm598_vm15, 1, %v1352_v0  ;;  %v623_v6 = vadd.s32 %v621_v20, %v619_v36  ;;  %v701_v63 = vand.u32 31, %v699_v38  ;;  %v343_v34 = vand.u32 2147483647, %v342_v47 }
  0xea   :  { %v345_v14 = vcvt.s32.f32 %v1758_v3  ;;  %v591_v19 = vshrl.u32 %v587_v23, 16  ;;  %v601_v49 = vadd.s32 %v599_v62, %v597_v10  ;;  %v615_v40 = vshrl.u32 %v610_v8, 16 }
  0xeb   :  { %v624_v56 = vadd.s32 %v623_v6, %v613_v61  ;;  %v694_v58 = vand.u32 8388607, %v687_v27  ;;  %v1780_v16 = vsub.s32 32, %v701_v63  ;;  %v493_v18 = vsub.s32 4294967266, %v1763_v26 }
  0xec   :  { %v572_v50 = vsel %vm566_vm9, %v569_v46, %v571_v54  ;;  %v593_v7 = vshrl.u32 %v588_v25, 16  ;;  %v602_v45 = vadd.s32 %v601_v49, %v591_v19  ;;  %v1785_v4 = vadd.s32 %v618_v17, %v614_v52 }
  0xed   :  { %v625_v47 = vadd.s32 %v624_v56, %v615_v40  ;;  %v1787_v3 = vshrl.u32 %v699_v38, 5  ;;  %v704_v8 = vshll.u32 %v1353_v33, %v701_v63  ;;  %v705_v59 = vshrl.u32 %v1354_v35, %v1780_v16 }
  0xee   :  { %v1790_v23 = vadd.s32 %v602_v45, %v593_v7  ;;  %v707_v28 = vshll.u32 %v1354_v35, %v701_v63  ;;  %v708_v1 = vshrl.u32 %v2518_v39, %v1780_v16  ;;  %v710_v52 = vshll.u32 %v2518_v39, %v701_v63 }
  0xef   :  { %v629_v25 = vadd.s32 1, %v625_v47  ;;  %v711_v38 = vshrl.u32 %v2516_v41, %v1780_v16  ;;  %v713_v17 = vshll.u32 %v2516_v41, %v701_v63  ;;  %v346_v46 = vmul.f32 %v345_v14, %v343_v34 }
  0xf0   :  { %v626_v36 = vmul.u32 %v1729_v42, %v572_v50  ;;  %vm628_vm3 = vc.u32 %v1790_v23, %v1785_v4  ;;  %v695_v54 = vor.u32 8388608, %v694_v58  ;;  %v494_v10 = vadd.s32 127, %v493_v18 }
  0xf1   :  { %v630_v20 = vsel %vm628_vm3, %v629_v25, %v625_v47  ;;  %v714_v62 = vshrl.u32 %v2514_v43, %v1780_v16  ;;  %v716_v61 = vshll.u32 %v2514_v43, %v701_v63  ;;  %v1808_v19 = vor.u32 %v705_v59, %v704_v8  ;;  %v48_v63 = vpop.permute.xlu2 %47 }
  0xf2   :  { %v631_v6 = vadd.s32 %v630_v20, %v626_v36  ;;  %v1810_v49 = vor.u32 %v708_v1, %v707_v28  ;;  %v717_v34 = vshrl.u32 %v2511_v48, %v1780_v16  ;;  %v1814_v42 = vor.u32 %v711_v38, %v710_v52 }
  0xf3   :  { %v715_v14 = vor.u32 %v714_v62, %v713_v17  ;;  %vm719_vm4 = vcmp.lt.s32.totalorder %v1787_v3, 1  ;;  %vm722_vm5 = vcmp.lt.s32.totalorder %v1787_v3, 4  ;;  %v347_v40 = vxor.u32 2147483648, %v346_v46 }
  0xf4   :  { %v632_v56 = vadd.s32 536870912, %v631_v6  ;;  %v718_v58 = vor.u32 %v717_v34, %v716_v61  ;;  %vm721_vm6 = vcmp.lt.s32.totalorder %v1787_v3, 3  ;;  %v202_v18 = vmul.f32 %v1725_v37, %v1680_v22 }
  0xf5   :  { %v210_v50 = vadd.f32 -0.16666654, %v1732_v31  ;;  %v489_v7 = vsub.s32 32, %v1763_v26  ;;  %v728_v45 = vsel %vm722_vm5, %v715_v14, 920167782  ;;  %v473_v47 = vadd.s32 %v1655_v57, %v1653_v60 }
  0xf6   :  { %v1827_v8 = vshrl.u32 %v632_v56, 30  ;;  %vm720_vm7 = vcmp.lt.s32.totalorder %v1787_v3, 2  ;;  %v727_v59 = vsel %vm719_vm4, %v1808_v19, %v1810_v49  ;;  %v495_v37 = vshll.u32 %v494_v10, 23 }
  0xf7   :  { %v729_v31 = vsel %vm721_vm6, %v1814_v42, %v728_v45  ;;  %v732_v28 = vsel %vm722_vm5, %v718_v58, 1326507024  ;;  %v1839_v1 = vshll.u32 %v695_v54, 8  ;;  %v1842_v60 = vmul.f32 %v1404_v9, %v48_v63 }
  0xf8   :  { %v348_v57 = vsel %vm227_vm0, %v347_v40, %v346_v46  ;;  %v731_v25 = vsel %vm719_vm4, %v1810_v49, %v1814_v42  ;;  %v491_v52 = vshrl.u32 %v473_v47, %v489_v7  ;;  %v634_v38 = vshll.u32 %v1827_v8, 30 }
  0xf9   :  { %v730_v17 = vsel %vm720_vm7, %v727_v59, %v729_v31  ;;  %v733_v36 = vsel %vm721_vm6, %v715_v14, %v732_v28  ;;  %v1860_v9 = vsel %vm73_vm1, %v195_v11, %v1536_v55  ;;  %v203_v46 = vadd.f32 -0.4999988, %v202_v18 }
  0xfa   :  { %v211_v54 = vmul.f32 %v210_v50, %v1680_v22  ;;  %vm1865_vm8 = vcmp.le.f32.partialorder %v225_v30, 0.7853982  ;;  %v490_v20 = vshll.u32 %v1690_v44, %v1763_v26  ;;  %v496_v62 = vor.u32 4788187, %v495_v37 }
  0xfb   :  { %v734_v61 = vsel %vm720_vm7, %v731_v25, %v733_v36  ;;  %v736_v34 = vand.u32 65535, %v1839_v1  ;;  %v1877_v55 = vsel %vm1865_vm8, %v1418_v21, %v348_v57  ;;  %v737_v11 = vshrl.u32 %v1839_v1, 16 }
  0xfc   :  { %v760_v30 = vand.u32 65535, %v730_v17  ;;  %v761_v14 = vshrl.u32 %v730_v17, 16  ;;  %v492_v40 = vor.u32 %v491_v52, %v490_v20  ;;  %v1880_v56 = vsub.s32 %v631_v6, %v634_v38 }
  0xfd   :  { %v738_v58 = vand.u32 65535, %v734_v61  ;;  %v739_v44 = vshrl.u32 %v734_v61, 16  ;;  %v198_v26 = vsel %vm1669_vm2, 0, %v1860_v9  ;;  %v204_v63 = vmul.f32 %v203_v46, %v1680_v22 }
  0xfe   :  { %v212_v18 = vadd.f32 1.0, %v211_v54  ;;  %v349_v50 = vsub.s32 4, %v1627_v5  ;;  %v1889_v7 = vmul.f32 %v1877_v55, %v1877_v55  ;;  %v497_v45 = vand.u32 2147483647, %v496_v62 }
  0xff   :  { %v740_v47 = vmul.u32 %v738_v58, %v736_v34  ;;  %v741_v59 = vmul.u32 %v739_v44, %v736_v34  ;;  %v742_v6 = vmul.u32 %v738_v58, %v737_v11  ;;  %v762_v37 = vmul.u32 %v760_v30, %v736_v34 }
 0x100   :  { %v763_v31 = vmul.u32 %v761_v14, %v736_v34  ;;  %v764_v28 = vmul.u32 %v760_v30, %v737_v11  ;;  %v499_v57 = vcvt.s32.f32 %v492_v40  ;;  %v637_v53 = vsub.s32 0, %v1880_v56 }
 0x101   :  { %v743_v25 = vmul.u32 %v739_v44, %v737_v11  ;;  %v744_v52 = vshll.u32 %v741_v59, 16  ;;  %v1893_v22 = vmul.f32 %v212_v18, %v1676_v32  ;;  %vm381_vm1 = vcmp.lt.s32.totalorder %v1412_v15, 0 }
 0x102   :  { %vm636_vm2 = vcmp.lt.s32.totalorder %v1880_v56, 0  ;;  %v746_v38 = vshll.u32 %v742_v6, 16  ;;  %v766_v17 = vshll.u32 %v763_v31, 16  ;;  %v500_v36 = vmul.f32 %v499_v57, %v497_v45 }
 0x103   :  { %vm748_vm9 = vc.u32 %v740_v47, %v744_v52  ;;  %v750_v9 = vadd.s32 %v744_v52, %v740_v47  ;;  %v765_v46 = vmul.u32 %v761_v14, %v737_v11  ;;  %v354_v54 = vmul.f32 -0.001358992, %v1889_v7 }
 0x104   :  { %v749_v20 = vsel %vm748_vm9, 1, %v1352_v0  ;;  %v768_v62 = vshll.u32 %v764_v28, 16  ;;  %vm770_vm10 = vc.u32 %v762_v37, %v766_v17  ;;  %v638_v61 = vsel %vm636_vm2, %v637_v53, %v1880_v56 }
 0x105   :  { %v703_v32 = vshrl.u32 %v1353_v33, %v1780_v16  ;;  %v724_v34 = vsel %vm722_vm5, %v1814_v42, 2102212464  ;;  %v751_v30 = vadd.s32 %v749_v20, %v743_v25  ;;  %v745_v40 = vshrl.u32 %v741_v59, 16 }
 0x106   :  { %vm752_vm11 = vc.u32 %v750_v9, %v746_v38  ;;  %v771_v11 = vsel %vm770_vm10, 1, %v1352_v0  ;;  %v772_v14 = vadd.s32 %v766_v17, %v762_v37  ;;  %v361_v58 = vmul.f32 -0.00019511016, %v1889_v7 }
 0x107   :  { %v501_v44 = vxor.u32 2147483648, %v500_v36  ;;  %v753_v18 = vsel %vm752_vm11, 1, %v1352_v0  ;;  %v773_v45 = vadd.s32 %v771_v11, %v765_v46  ;;  %v747_v47 = vshrl.u32 %v742_v6, 16 }
 0x108   :  { %v755_v57 = vadd.s32 %v753_v18, %v751_v30  ;;  %v767_v53 = vshrl.u32 %v763_v31, 16  ;;  %vm774_vm12 = vc.u32 %v772_v14, %v768_v62  ;;  %v639_v16 = vclz %v638_v61 }
 0x109   :  { %v723_v42 = vsel %vm719_vm4, %v703_v32, %v1808_v19  ;;  %v725_v59 = vsel %vm721_vm6, %v1810_v49, %v724_v34  ;;  %v775_v37 = vsel %vm774_vm12, 1, %v1352_v0  ;;  %v769_v52 = vshrl.u32 %v764_v28, 16 }
 0x10a   :  { %v756_v25 = vadd.s32 %v755_v57, %v745_v40  ;;  %v777_v38 = vadd.s32 %v775_v37, %v773_v45  ;;  %v844_v17 = vand.u32 2139095040, %v1842_v60  ;;  %v355_v6 = vadd.f32 0.041655596, %v354_v54 }
 0x10b   :  { %v362_v9 = vadd.f32 0.008332121, %v361_v58  ;;  %v502_v31 = vsel %vm381_vm1, %v501_v44, %v500_v36  ;;  %v1918_v46 = vadd.s32 %v772_v14, %v768_v62  ;;  %v726_v19 = vsel %vm720_vm7, %v723_v42, %v725_v59  ;;  %v53_v36 = vpop.permute.xlu0 %52  ;;  %v1351_v14 = vld [vmem:[%s2508_s1] ss:$0 sm:$0xff] }
 0x10c   :  { %v1922_v20 = vadd.s32 %v756_v25, %v747_v47  ;;  %v778_v49 = vadd.s32 %v777_v38, %v767_v53  ;;  %v845_v61 = vshrl.u32 %v844_v17, 23  ;;  %v205_v32 = vadd.f32 1.0, %v204_v63  ;;  %v58_v47 = vpop.permute.xlu1 %57 }
 0x10d   :  { %v215_v34 = vand.u32 3, %v198_v26  ;;  %v350_v28 = vsel %vm227_vm0, %v349_v50, %v1627_v5  ;;  %vm1929_vm13 = vcmp.le.f32.partialorder %v379_v24, 0.7853982  ;;  %v1326_v62 = vadd.s32 4294967294, %v639_v16 }
 0x10e   :  { %v1936_v3 = vsel %vm1929_vm13, %v1412_v15, %v502_v31  ;;  %v779_v30 = vadd.s32 %v778_v49, %v769_v52  ;;  %v1331_v63 = vadd.s32 4294967169, %v845_v61  ;;  %v356_v26 = vmul.f32 %v355_v6, %v1889_v7 }
 0x10f   :  { %v780_v40 = vmul.u32 %v1839_v1, %v726_v19  ;;  %vm782_vm14 = vc.u32 %v1922_v20, %v1918_v46  ;;  %v218_v24 = vxor.u32 2147483648, %v1893_v22  ;;  %v363_v5 = vmul.f32 %v362_v9, %v1889_v7 }
 0x110   :  { %v783_v50 = vadd.s32 1, %v779_v30  ;;  %v851_v11 = vadd.s32 1, %v1331_v63  ;;  %v1947_v58 = vmul.f32 %v1351_v14, %v53_v36  ;;  %vm217_vm15 = vcmp.eq.s32.totalorder %v215_v34, 0 }
 0x111   :  { %v352_v44 = vsel %vm1865_vm8, 0, %v350_v28  ;;  %v1953_v1 = vmul.f32 %v1936_v3, %v1936_v3  ;;  %v221_v18 = vxor.u32 2147483648, %v205_v32  ;;  %vm1327_vm0 = vcmp.lt.s32.totalorder %v1326_v62, 0 }
 0x112   :  { %v784_v45 = vsel %vm782_vm14, %v783_v50, %v779_v30  ;;  %vm852_vm3 = vcmp.gt.s32.totalorder %v851_v11, 0  ;;  %v357_v57 = vadd.f32 -0.4999988, %v356_v26  ;;  %v503_v53 = vsub.s32 4, %v1682_v13 }
 0x113   :  { %v785_v16 = vadd.s32 %v784_v45, %v780_v40  ;;  %v853_v42 = vsel %vm852_vm3, %v851_v11, 0  ;;  %v219_v59 = vsel %vm217_vm15, %v205_v32, %v218_v24  ;;  %v364_v37 = vadd.f32 -0.16666654, %v363_v5 }
 0x114   :  { %v2510_v25 = vand.u32 2147483647, %v1842_v60  ;;  %v855_v10 = vand.u32 31, %v853_v42  ;;  %vm220_vm4 = vcmp.eq.s32.totalorder %v215_v34, 2  ;;  %v515_v52 = vmul.f32 -0.00019511016, %v1953_v1 }
 0x115   :  { %v1958_v38 = vsel %vm1327_vm0, 0, %v1326_v62  ;;  %v786_v17 = vadd.s32 536870912, %v785_v16  ;;  %v1960_v6 = vmul.f32 %v1351_v14, %v58_v47  ;;  %vm216_vm5 = vcmp.lt.s32.totalorder %v215_v34, 2 }
 0x116   :  { %v222_v9 = vsel %vm220_vm4, %v221_v18, %v1893_v22  ;;  %v1963_v31 = vsub.s32 32, %v855_v10  ;;  %v1967_v49 = vand.u32 3, %v352_v44  ;;  %v1972_v61 = vsel %vm381_vm1, %v503_v53, %v1682_v13 }
 0x117   :  { %v1965_v19 = vsel %vm216_vm5, %v219_v59, %v222_v9  ;;  %v1974_v32 = vshrl.u32 %v786_v17, 30  ;;  %v358_v28 = vmul.f32 %v357_v57, %v1889_v7  ;;  %v365_v36 = vmul.f32 %v364_v37, %v1889_v7 }
 0x118   :  { %v647_v34 = vsub.s32 4294967266, %v1958_v38  ;;  %v848_v22 = vand.u32 8388607, %v2510_v25  ;;  %v516_v62 = vadd.f32 0.008332121, %v515_v52  ;;  %v858_v63 = vshll.u32 %v1353_v33, %v855_v10 }
 0x119   :  { %v788_v30 = vshll.u32 %v1974_v32, 30  ;;  %v861_v26 = vshll.u32 %v1354_v35, %v855_v10  ;;  %v859_v13 = vshrl.u32 %v1354_v35, %v1963_v31  ;;  %v862_v40 = vshrl.u32 %v2518_v39, %v1963_v31 }
 0x11a   :  { %v867_v7 = vshll.u32 %v2516_v41, %v855_v10  ;;  %v868_v24 = vshrl.u32 %v2514_v43, %v1963_v31  ;;  %v1993_v50 = vshrl.u32 %v853_v42, 5  ;;  %v864_v11 = vshll.u32 %v2518_v39, %v855_v10 }
 0x11b   :  { %v1991_v5 = vsub.s32 %v785_v16, %v788_v30  ;;  %v865_v14 = vshrl.u32 %v2516_v41, %v1963_v31  ;;  %v508_v44 = vmul.f32 -0.001358992, %v1953_v1  ;;  %v643_v18 = vsub.s32 32, %v1958_v38 }
 0x11c   :  { %v648_v45 = vadd.s32 127, %v647_v34  ;;  %v849_v47 = vor.u32 8388608, %v848_v22  ;;  %v870_v53 = vshll.u32 %v2514_v43, %v855_v10  ;;  %v871_v16 = vshrl.u32 %v2511_v48, %v1963_v31 }
 0x11d   :  { %vm790_vm6 = vcmp.lt.s32.totalorder %v1991_v5, 0  ;;  %v791_v57 = vsub.s32 0, %v1991_v5  ;;  %v627_v42 = vadd.s32 %v1785_v4, %v1790_v23  ;;  %v2007_v59 = vor.u32 %v859_v13, %v858_v63 }
 0x11e   :  { %v2009_v37 = vor.u32 %v862_v40, %v861_v26  ;;  %v869_v52 = vor.u32 %v868_v24, %v867_v7  ;;  %v517_v17 = vmul.f32 %v516_v62, %v1953_v1  ;;  %v866_v34 = vor.u32 %v865_v14, %v864_v11 }
 0x11f   :  { %v792_v9 = vsel %vm790_vm6, %v791_v57, %v1991_v5  ;;  %vm873_vm7 = vcmp.lt.s32.totalorder %v1993_v50, 1  ;;  %v645_v22 = vshrl.u32 %v627_v42, %v643_v18  ;;  %v649_v10 = vshll.u32 %v648_v45, 23 }
 0x120   :  { %v793_v30 = vclz %v792_v9  ;;  %vm875_vm8 = vcmp.lt.s32.totalorder %v1993_v50, 3  ;;  %v872_v25 = vor.u32 %v871_v16, %v870_v53  ;;  %vm874_vm1 = vcmp.lt.s32.totalorder %v1993_v50, 2 }
 0x121   :  { %vm876_vm2 = vcmp.lt.s32.totalorder %v1993_v50, 4  ;;  %v2017_v4 = vshll.u32 %v849_v47, 8  ;;  %v366_v23 = vadd.f32 1.0, %v365_v36  ;;  %v881_v62 = vsel %vm873_vm7, %v2007_v59, %v2009_v37 }
 0x122   :  { %v1329_v63 = vadd.s32 4294967294, %v793_v30  ;;  %v882_v26 = vsel %vm876_vm2, %v869_v52, 920167782  ;;  %v509_v13 = vadd.f32 0.041655596, %v508_v44  ;;  %v644_v7 = vshll.u32 %v1880_v56, %v1958_v38 }
 0x123   :  { %v518_v40 = vadd.f32 -0.16666654, %v517_v17  ;;  %v883_v24 = vsel %vm875_vm8, %v866_v34, %v882_v26  ;;  %v650_v11 = vor.u32 4788187, %v649_v10  ;;  %v885_v14 = vsel %vm873_vm7, %v2009_v37, %v866_v34 }
 0x124   :  { %vm1330_vm9 = vcmp.lt.s32.totalorder %v1329_v63, 0  ;;  %v884_v36 = vsel %vm874_vm1, %v881_v62, %v883_v24  ;;  %v646_v18 = vor.u32 %v645_v22, %v644_v7  ;;  %v886_v44 = vsel %vm876_vm2, %v872_v25, 1326507024 }
 0x125   :  { %v796_v45 = vsel %vm1330_vm9, 0, %v1329_v63  ;;  %v890_v47 = vand.u32 65535, %v2017_v4  ;;  %v2037_v56 = vadd.f32 1.0, %v358_v28  ;;  %v887_v57 = vsel %vm875_vm8, %v869_v52, %v886_v44 }
 0x126   :  { %v801_v38 = vsub.s32 4294967266, %v796_v45  ;;  %v891_v53 = vshrl.u32 %v2017_v4, 16  ;;  %v2043_v16 = vmul.f32 %v366_v23, %v1877_v55  ;;  %v888_v42 = vsel %vm874_vm1, %v885_v14, %v887_v57 }
 0x127   :  { %v914_v17 = vand.u32 65535, %v884_v36  ;;  %v915_v9 = vshrl.u32 %v884_v36, 16  ;;  %v510_v25 = vmul.f32 %v509_v13, %v1953_v1  ;;  %v651_v22 = vand.u32 2147483647, %v650_v11 }
 0x128   :  { %v802_v10 = vadd.s32 127, %v801_v38  ;;  %v892_v28 = vand.u32 65535, %v888_v42  ;;  %v519_v30 = vmul.f32 %v518_v40, %v1953_v1  ;;  %v653_v63 = vcvt.s32.f32 %v646_v18 }
 0x129   :  { %v893_v62 = vshrl.u32 %v888_v42, 16  ;;  %v917_v52 = vmul.u32 %v915_v9, %v890_v47  ;;  %v781_v26 = vadd.s32 %v1918_v46, %v1922_v20  ;;  %v797_v55 = vsub.s32 32, %v796_v45 }
 0x12a   :  { %v803_v23 = vshll.u32 %v802_v10, 23  ;;  %v896_v7 = vmul.u32 %v892_v28, %v891_v53  ;;  %v894_v24 = vmul.u32 %v892_v28, %v890_v47  ;;  %v916_v44 = vmul.u32 %v914_v17, %v890_v47 }
 0x12b   :  { %v895_v14 = vmul.u32 %v893_v62, %v890_v47  ;;  %v918_v36 = vmul.u32 %v914_v17, %v891_v53  ;;  %v654_v57 = vmul.f32 %v653_v63, %v651_v22  ;;  %v857_v13 = vshrl.u32 %v1353_v33, %v1963_v31 }
 0x12c   :  { %v878_v40 = vsel %vm876_vm2, %v866_v34, 2102212464  ;;  %v897_v11 = vmul.u32 %v893_v62, %v891_v53  ;;  %vm535_vm10 = vcmp.lt.s32.totalorder %v1637_v51, 0  ;;  %v900_v38 = vshll.u32 %v896_v7, 16 }
 0x12d   :  { %v898_v18 = vshll.u32 %v895_v14, 16  ;;  %v919_v46 = vmul.u32 %v915_v9, %v891_v53  ;;  %v920_v20 = vshll.u32 %v917_v52, 16  ;;  %v798_v42 = vshll.u32 %v1991_v5, %v796_v45 }
 0x12e   :  { %v799_v10 = vshrl.u32 %v781_v26, %v797_v55  ;;  %v804_v28 = vor.u32 4788187, %v803_v23  ;;  %v922_v47 = vshll.u32 %v918_v36, 16  ;;  %v899_v31 = vshrl.u32 %v895_v14, 16 }
 0x12f   :  { %vm902_vm11 = vc.u32 %v894_v24, %v898_v18  ;;  %v904_v17 = vadd.s32 %v898_v18, %v894_v24  ;;  %vm924_vm12 = vc.u32 %v916_v44, %v920_v20  ;;  %v926_v22 = vadd.s32 %v920_v20, %v916_v44 }
 0x130   :  { %v903_v63 = vsel %vm902_vm11, 1, %v1352_v0  ;;  %v921_v34 = vshrl.u32 %v917_v52, 16  ;;  %v925_v62 = vsel %vm924_vm12, 1, %v1352_v0  ;;  %vm214_vm14 = vweird.f32 %v1407_v12 }
 0x131   :  { %v905_v48 = vadd.s32 %v903_v63, %v897_v11  ;;  %vm906_vm15 = vc.u32 %v904_v17, %v900_v38  ;;  %v927_v53 = vadd.s32 %v925_v62, %v919_v46  ;;  %vm928_vm0 = vc.u32 %v926_v22, %v922_v47 }
 0x132   :  { %vm371_vm3 = vcmp.eq.s32.totalorder %v1967_v49, 0  ;;  %v655_v5 = vxor.u32 2147483648, %v654_v57  ;;  %v800_v45 = vor.u32 %v799_v10, %v798_v42  ;;  %v907_v9 = vsel %vm906_vm15, 1, %v1352_v0 }
 0x133   :  { %v929_v26 = vsel %vm928_vm0, 1, %v1352_v0  ;;  %v901_v55 = vshrl.u32 %v896_v7, 16  ;;  %v909_v23 = vadd.s32 %v907_v9, %v905_v48  ;;  %v923_v24 = vshrl.u32 %v918_v36, 16 }
 0x134   :  { %v931_v52 = vadd.s32 %v929_v26, %v927_v53  ;;  %v372_v14 = vxor.u32 2147483648, %v2043_v16  ;;  %vm374_vm4 = vcmp.eq.s32.totalorder %v1967_v49, 2  ;;  %v877_v44 = vsel %vm873_vm7, %v857_v13, %v2007_v59 }
 0x135   :  { %v879_v11 = vsel %vm875_vm8, %v2009_v37, %v878_v40  ;;  %v998_v18 = vand.u32 2139095040, %v1947_v58  ;;  %vm370_vm5 = vcmp.lt.s32.totalorder %v1967_v49, 2  ;;  %v805_v7 = vand.u32 2147483647, %v804_v28 }
 0x136   :  { %v910_v48 = vadd.s32 %v909_v23, %v899_v31  ;;  %v2073_v36 = vadd.s32 %v926_v22, %v922_v47  ;;  %v932_v38 = vadd.s32 %v931_v52, %v921_v34  ;;  %v511_v46 = vadd.f32 -0.4999988, %v510_v25 }
 0x137   :  { %v520_v20 = vadd.f32 1.0, %v519_v30  ;;  %v656_v42 = vsel %vm535_vm10, %v655_v5, %v654_v57  ;;  %v999_v10 = vshrl.u32 %v998_v18, 23  ;;  %v807_v59 = vcvt.s32.f32 %v800_v45 }
 0x138   :  { %v880_v13 = vsel %vm874_vm1, %v877_v44, %v879_v11  ;;  %v2079_v37 = vadd.s32 %v910_v48, %v901_v55  ;;  %v933_v40 = vadd.s32 %v932_v38, %v923_v24  ;;  %vm368_vm6 = vweird.f32 %v1418_v21 }
 0x139   :  { %v375_v28 = vxor.u32 2147483648, %v2037_v56  ;;  %v506_v25 = vsel %vm1929_vm13, 0, %v1972_v61  ;;  %vm2088_vm7 = vcmp.le.f32.partialorder %v533_v2, 0.7853982  ;;  %v1334_v57 = vadd.s32 4294967169, %v999_v10 }
 0x13a   :  { %v2095_v50 = vsel %vm2088_vm7, %v1637_v51, %v656_v42  ;;  %v808_v47 = vmul.f32 %v807_v59, %v805_v7  ;;  %vm936_vm8 = vc.u32 %v2079_v37, %v2073_v36  ;;  %v937_v17 = vadd.s32 1, %v933_v40 }
 0x13b   :  { %v2102_v54 = vsel %vm214_vm14, nan, %v1965_v19  ;;  %v512_v2 = vmul.f32 %v511_v46, %v1953_v1  ;;  %v934_v61 = vmul.u32 %v2017_v4, %v880_v13  ;;  %v1005_v22 = vadd.s32 1, %v1334_v57 }
 0x13c   :  { %v373_v31 = vsel %vm371_vm3, %v2037_v56, %v372_v14  ;;  %v2110_v63 = vmul.f32 %v520_v20, %v1936_v3  ;;  %v657_v34 = vsub.s32 4, %v1827_v8  ;;  %vm2115_vm13 = vcmp.le.f32.partialorder %v687_v27, 0.7853982 }
 0x13d   :  { %v938_v19 = vsel %vm936_vm8, %v937_v17, %v933_v40  ;;  %v2119_v1 = vand.u32 3, %v506_v25  ;;  %v2123_v4 = vmul.f32 %v2095_v50, %v2095_v50  ;;  %vm1006_vm1 = vcmp.gt.s32.totalorder %v1005_v22, 0 }
 0x13e   :  { %v939_v62 = vadd.s32 %v938_v19, %v934_v61  ;;  %v376_v3 = vsel %vm374_vm4, %v375_v28, %v2043_v16  ;;  %v809_v56 = vxor.u32 2147483648, %v808_v47  ;;  %v2513_v53 = vand.u32 2147483647, %v1947_v58 }
 0x13f   :  { %v1007_v27 = vsel %vm1006_vm1, %v1005_v22, 0  ;;  %v377_v5 = vsel %vm370_vm5, %v373_v31, %v376_v3  ;;  %v2131_v45 = vadd.f32 1.0, %v512_v2  ;;  %v1152_v26 = vand.u32 2139095040, %v1960_v6 }
 0x140   :  { %v940_v9 = vadd.s32 536870912, %v939_v62  ;;  %v526_v55 = vxor.u32 2147483648, %v2110_v63  ;;  %v2138_v23 = vsel %vm535_vm10, %v657_v34, %v1827_v8  ;;  %vm689_vm2 = vcmp.lt.s32.totalorder %v1685_v29, 0 }
 0x141   :  { %v1009_v16 = vand.u32 31, %v1007_v27  ;;  %vm525_vm9 = vcmp.eq.s32.totalorder %v2119_v1, 0  ;;  %v662_v49 = vmul.f32 -0.001358992, %v2123_v4  ;;  %v669_v24 = vmul.f32 -0.00019511016, %v2123_v4 }
 0x142   :  { %v2144_v52 = vshrl.u32 %v940_v9, 30  ;;  %v2148_v14 = vsel %vm368_vm6, nan, %v377_v5  ;;  %v810_v44 = vsel %vm689_vm2, %v809_v56, %v808_v47  ;;  %v1002_v8 = vand.u32 8388607, %v2513_v53 }
 0x143   :  { %v2154_v11 = vsub.s32 32, %v1009_v16  ;;  %v1153_v38 = vshrl.u32 %v1152_v26, 23  ;;  %v2162_v21 = vsel %vm525_vm9, %v2131_v45, %v526_v55  ;;  %v2170_v10 = vadd.f32 0.041655596, %v662_v49 }
 0x144   :  { %v942_v48 = vshll.u32 %v2144_v52, 30  ;;  %v2172_v59 = vadd.f32 0.008332121, %v669_v24  ;;  %v2177_v13 = vsel %vm2115_vm13, %v1685_v29, %v810_v44  ;;  %v1003_v28 = vor.u32 8388608, %v1002_v8 }
 0x145   :  { %v1013_v46 = vshrl.u32 %v1354_v35, %v2154_v11  ;;  %v1016_v20 = vshrl.u32 %v2518_v39, %v2154_v11  ;;  %v1019_v42 = vshrl.u32 %v2516_v41, %v2154_v11  ;;  %v1012_v25 = vshll.u32 %v1353_v33, %v1009_v16 }
 0x146   :  { %v943_v40 = vsub.s32 %v939_v62, %v942_v48  ;;  %v1015_v57 = vshll.u32 %v1354_v35, %v1009_v16  ;;  %v1018_v47 = vshll.u32 %v2518_v39, %v1009_v16  ;;  %v2182_v2 = vshrl.u32 %v1007_v27, 5 }
 0x147   :  { %v1337_v61 = vadd.s32 4294967169, %v1153_v38  ;;  %v2184_v22 = vor.u32 %v1013_v46, %v1012_v25  ;;  %v1022_v19 = vshrl.u32 %v2514_v43, %v2154_v11  ;;  %v1021_v3 = vshll.u32 %v2516_v41, %v1009_v16 }
 0x148   :  { %vm944_vm10 = vcmp.lt.s32.totalorder %v943_v40, 0  ;;  %v945_v17 = vsub.s32 0, %v943_v40  ;;  %v2186_v31 = vor.u32 %v1016_v20, %v1015_v57  ;;  %v1020_v34 = vor.u32 %v1019_v42, %v1018_v47 }
 0x149   :  { %v1024_v56 = vshll.u32 %v2514_v43, %v1009_v16  ;;  %v2531_v5 = vmov 1326507024   ;;  %v2197_v26 = vmul.f32 %v2177_v13, %v2177_v13  ;;  %v2520_v49 = vand.u32 2147483647, %v1960_v6 }
 0x14a   :  { %v946_v62 = vsel %vm944_vm10, %v945_v17, %v943_v40  ;;  %v1025_v9 = vshrl.u32 %v2531_v5, %v2154_v11  ;;  %v935_v24 = vadd.s32 %v2073_v36, %v2079_v37  ;;  %v1023_v44 = vor.u32 %v1022_v19, %v1021_v3 }
 0x14b   :  { %v947_v55 = vclz %v946_v62  ;;  %v2202_v48 = vshll.u32 %v1003_v28, 8  ;;  %vm1027_vm11 = vcmp.lt.s32.totalorder %v2182_v2, 1  ;;  %vm1030_vm12 = vcmp.lt.s32.totalorder %v2182_v2, 4 }
 0x14c   :  { %v1026_v8 = vor.u32 %v1025_v9, %v1024_v56  ;;  %v1159_v38 = vadd.s32 1, %v1337_v61  ;;  %vm1029_vm14 = vcmp.lt.s32.totalorder %v2182_v2, 3  ;;  %v1035_v46 = vsel %vm1027_vm11, %v2184_v22, %v2186_v31 }
 0x14d   :  { %v1332_v16 = vadd.s32 4294967294, %v947_v55  ;;  %v1036_v36 = vsel %vm1030_vm12, %v1023_v44, 920167782  ;;  %v1039_v37 = vsel %vm1027_vm11, %v2186_v31, %v1020_v34  ;;  %vm1028_vm0 = vcmp.lt.s32.totalorder %v2182_v2, 2 }
 0x14e   :  { %v1037_v20 = vsel %vm1029_vm14, %v1020_v34, %v1036_v36  ;;  %v1040_v42 = vsel %vm1030_vm12, %v1026_v8, 1326507024  ;;  %v1044_v47 = vand.u32 65535, %v2202_v48  ;;  %v1045_v62 = vshrl.u32 %v2202_v48, 16 }
 0x14f   :  { %vm1333_vm15 = vcmp.lt.s32.totalorder %v1332_v16, 0  ;;  %v1038_v25 = vsel %vm1028_vm0, %v1035_v46, %v1037_v20  ;;  %v1041_v57 = vsel %vm1029_vm14, %v1023_v44, %v1040_v42  ;;  %vm1160_vm3 = vcmp.gt.s32.totalorder %v1159_v38, 0 }
 0x150   :  { %v950_v28 = vsel %vm1333_vm15, 0, %v1332_v16  ;;  %v1042_v19 = vsel %vm1028_vm0, %v1039_v37, %v1041_v57  ;;  %v1069_v9 = vshrl.u32 %v1038_v25, 16  ;;  %v1068_v46 = vand.u32 65535, %v1038_v25 }
 0x151   :  { %v951_v17 = vsub.s32 32, %v950_v28  ;;  %v955_v61 = vsub.s32 4294967266, %v950_v28  ;;  %v1046_v3 = vand.u32 65535, %v1042_v19  ;;  %v1047_v56 = vshrl.u32 %v1042_v19, 16 }
 0x152   :  { %v952_v55 = vshll.u32 %v943_v40, %v950_v28  ;;  %v2230_v36 = vmul.f32 -0.001358992, %v2197_v26  ;;  %v823_v44 = vmul.f32 -0.00019511016, %v2197_v26  ;;  %v1032_v37 = vsel %vm1030_vm12, %v1020_v34, 2102212464 }
 0x153   :  { %v953_v8 = vshrl.u32 %v935_v24, %v951_v17  ;;  %v956_v16 = vadd.s32 127, %v955_v61  ;;  %v1049_v20 = vmul.u32 %v1047_v56, %v1044_v47  ;;  %v1050_v42 = vmul.u32 %v1046_v3, %v1045_v62 }
 0x154   :  { %v1071_v57 = vmul.u32 %v1069_v9, %v1044_v47  ;;  %v1048_v19 = vmul.u32 %v1046_v3, %v1044_v47  ;;  %v1051_v7 = vmul.u32 %v1047_v56, %v1045_v62  ;;  %v1161_v40 = vsel %vm1160_vm3, %v1159_v38, 0 }
 0x155   :  { %v954_v53 = vor.u32 %v953_v8, %v952_v55  ;;  %v957_v27 = vshll.u32 %v956_v16, 23  ;;  %v1052_v18 = vshll.u32 %v1049_v20, 16  ;;  %v1054_v28 = vshll.u32 %v1050_v42, 16 }
 0x156   :  { %v1070_v25 = vmul.u32 %v1068_v46, %v1044_v47  ;;  %v1072_v17 = vmul.u32 %v1068_v46, %v1045_v62  ;;  %v1074_v41 = vshll.u32 %v1071_v57, 16  ;;  %v1073_v8 = vmul.u32 %v1069_v9, %v1045_v62 }
 0x157   :  { %v958_v24 = vor.u32 4788187, %v957_v27  ;;  %v961_v61 = vcvt.s32.f32 %v954_v53  ;;  %vm1056_vm4 = vc.u32 %v1048_v19, %v1052_v18  ;;  %v1058_v43 = vadd.s32 %v1052_v18, %v1048_v19 }
 0x158   :  { %v1057_v55 = vsel %vm1056_vm4, 1, %v1352_v0  ;;  %v1076_v16 = vshll.u32 %v1072_v17, 16  ;;  %vm843_vm5 = vcmp.lt.s32.totalorder %v1842_v60, 0  ;;  %vm1078_vm8 = vc.u32 %v1070_v25, %v1074_v41 }
 0x159   :  { %v959_v39 = vand.u32 2147483647, %v958_v24  ;;  %v1059_v34 = vadd.s32 %v1057_v55, %v1051_v7  ;;  %vm1060_vm6 = vc.u32 %v1058_v43, %v1054_v28  ;;  %v1080_v3 = vadd.s32 %v1074_v41, %v1070_v25 }
 0x15a   :  { %v1011_v27 = vshrl.u32 %v1353_v33, %v2154_v11  ;;  %v1061_v53 = vsel %vm1060_vm6, 1, %v1352_v0  ;;  %v1079_v18 = vsel %vm1078_vm8, 1, %v1352_v0  ;;  %v1053_v47 = vshrl.u32 %v1049_v20, 16 }
 0x15b   :  { %v962_v38 = vmul.f32 %v961_v61, %v959_v39  ;;  %v1063_v56 = vadd.s32 %v1061_v53, %v1059_v34  ;;  %v1081_v46 = vadd.s32 %v1079_v18, %v1073_v8  ;;  %vm1082_vm1 = vc.u32 %v1080_v3, %v1076_v16 }
 0x15c   :  { %v2532_v62 = vand.u32 2147483647, %v1842_v60  ;;  %v1031_v39 = vsel %vm1027_vm11, %v1011_v27, %v2184_v22  ;;  %v1033_v41 = vsel %vm1029_vm14, %v2186_v31, %v1032_v37  ;;  %v1083_v43 = vsel %vm1082_vm1, 1, %v1352_v0 }
 0x15d   :  { %v1163_v11 = vand.u32 31, %v1161_v40  ;;  %v1055_v7 = vshrl.u32 %v1050_v42, 16  ;;  %v1064_v20 = vadd.s32 %v1063_v56, %v1053_v47  ;;  %v1075_v19 = vshrl.u32 %v1071_v57, 16 }
 0x15e   :  { %vm2244_vm9 = vcmp.le.f32.partialorder %v2532_v62, 0.7853982  ;;  %v1085_v24 = vadd.s32 %v1083_v43, %v1081_v46  ;;  %v824_v28 = vadd.f32 0.008332121, %v823_v44  ;;  %v963_v25 = vxor.u32 2147483648, %v962_v38 }
 0x15f   :  { %v1156_v61 = vand.u32 8388607, %v2520_v49  ;;  %v2257_v55 = vsub.s32 32, %v1163_v11  ;;  %v1034_v22 = vsel %vm1028_vm0, %v1031_v39, %v1033_v41  ;;  %v2261_v8 = vadd.s32 %v1064_v20, %v1055_v7 }
 0x160   :  { %v1077_v31 = vshrl.u32 %v1072_v17, 16  ;;  %v1086_v37 = vadd.s32 %v1085_v24, %v1075_v19  ;;  %v2263_v34 = vadd.s32 %v1080_v3, %v1076_v16  ;;  %v1166_v42 = vshll.u32 %v1353_v33, %v1163_v11 }
 0x161   :  { %v1167_v44 = vshrl.u32 %v1354_v35, %v2257_v55  ;;  %v2535_v57 = vmov 2131351028   ;;  %v2270_v18 = vshrl.u32 %v1161_v40, 5  ;;  %v1169_v2 = vshll.u32 %v1354_v35, %v1163_v11 }
 0x162   :  { %v1170_v27 = vshrl.u32 %v2535_v57, %v2257_v55  ;;  %v1087_v53 = vadd.s32 %v1086_v37, %v1077_v31  ;;  %v2536_v47 = vmov 2102212464   ;;  %vm528_vm10 = vcmp.eq.s32.totalorder %v2119_v1, 2 }
 0x163   :  { %v1173_v56 = vshrl.u32 %v2536_v47, %v2257_v55  ;;  %v964_v17 = vsel %vm843_vm5, %v963_v25, %v962_v38  ;;  %vm1090_vm11 = vc.u32 %v2261_v8, %v2263_v34  ;;  %v2280_v16 = vor.u32 %v1167_v44, %v1166_v42 }
 0x164   :  { %v1172_v3 = vshll.u32 %v2535_v57, %v1163_v11  ;;  %vm524_vm12 = vcmp.lt.s32.totalorder %v2119_v1, 2  ;;  %v1091_v40 = vadd.s32 1, %v1087_v53  ;;  %v2284_v46 = vor.u32 %v1170_v27, %v1169_v2 }
 0x165   :  { %v1175_v35 = vshll.u32 %v2536_v47, %v1163_v11  ;;  %v2537_v62 = vmov 920167782   ;;  %v1088_v41 = vmul.u32 %v2202_v48, %v1034_v22  ;;  %v1157_v38 = vor.u32 8388608, %v1156_v61 }
 0x166   :  { %v1176_v39 = vshrl.u32 %v2537_v62, %v2257_v55  ;;  %v1178_v43 = vshll.u32 %v2537_v62, %v1163_v11  ;;  %v1179_v7 = vshrl.u32 %v2531_v5, %v2257_v55  ;;  %v2296_v20 = vsel %vm2244_vm9, %v1842_v60, %v964_v17 }
 0x167   :  { %v1092_v19 = vsel %vm1090_vm11, %v1091_v40, %v1087_v53  ;;  %v1174_v24 = vor.u32 %v1173_v56, %v1172_v3  ;;  %vm1181_vm14 = vcmp.lt.s32.totalorder %v2270_v18, 1  ;;  %vm1184_vm15 = vcmp.lt.s32.totalorder %v2270_v18, 4 }
 0x168   :  { %v1177_v25 = vor.u32 %v1176_v39, %v1175_v35  ;;  %v1093_v31 = vadd.s32 %v1092_v19, %v1088_v41  ;;  %v1180_v37 = vor.u32 %v1179_v7, %v1178_v43  ;;  %v671_v48 = vmul.f32 %v2172_v59, %v2123_v4 }
 0x169   :  { %v817_v11 = vadd.f32 0.041655596, %v2230_v36  ;;  %v1189_v5 = vsel %vm1181_vm14, %v2280_v16, %v2284_v46  ;;  %v825_v22 = vmul.f32 %v824_v28, %v2197_v26  ;;  %v2312_v42 = vmul.f32 %v2296_v20, %v2296_v20 }
 0x16a   :  { %v1190_v61 = vsel %vm1184_vm15, %v1177_v25, 920167782  ;;  %v1094_v44 = vadd.s32 536870912, %v1093_v31  ;;  %vm1183_vm0 = vcmp.lt.s32.totalorder %v2270_v18, 3  ;;  %vm1182_vm3 = vcmp.lt.s32.totalorder %v2270_v18, 2 }
 0x16b   :  { %v1191_v59 = vsel %vm1183_vm0, %v1174_v24, %v1190_v61  ;;  %v1194_v36 = vsel %vm1184_vm15, %v1180_v37, 1326507024  ;;  %v2320_v57 = vshll.u32 %v1157_v38, 8  ;;  %v664_v28 = vmul.f32 %v2170_v10, %v2123_v4 }
 0x16c   :  { %v2324_v27 = vshrl.u32 %v1094_v44, 30  ;;  %v1192_v53 = vsel %vm1182_vm3, %v1189_v5, %v1191_v59  ;;  %v1193_v2 = vsel %vm1181_vm14, %v2284_v46, %v1174_v24  ;;  %v2538_v47 = vxor.u32 2147483648, %v2131_v45 }
 0x16d   :  { %v2539_v17 = vsel %vm2088_vm7, 0, %v2138_v23  ;;  %v1195_v3 = vsel %vm1183_vm0, %v1177_v25, %v1194_v36  ;;  %v1223_v40 = vshrl.u32 %v1192_v53, 16  ;;  %v672_v62 = vadd.f32 -0.16666654, %v671_v48 }
 0x16e   :  { %v530_v56 = vsel %vm528_vm10, %v2538_v47, %v2110_v63  ;;  %v2340_v10 = vand.u32 3, %v2539_v17  ;;  %v977_v45 = vmul.f32 -0.00019511016, %v2312_v42  ;;  %v1096_v63 = vshll.u32 %v2324_v27, 30 }
 0x16f   :  { %v2347_v35 = vsel %vm524_vm12, %v2162_v21, %v530_v56  ;;  %v818_v30 = vmul.f32 %v817_v11, %v2197_v26  ;;  %v826_v39 = vadd.f32 -0.16666654, %v825_v22  ;;  %v1196_v23 = vsel %vm1182_vm3, %v1193_v2, %v1195_v3 }
 0x170   :  { %v1198_v41 = vand.u32 65535, %v2320_v57  ;;  %v2355_v38 = vadd.f32 -0.4999988, %v664_v28  ;;  %v2540_v1 = vsub.s32 4, %v1974_v32  ;;  %v1097_v43 = vsub.s32 %v1093_v31, %v1096_v63 }
 0x171   :  { %v1222_v7 = vand.u32 65535, %v1192_v53  ;;  %v970_v19 = vmul.f32 -0.001358992, %v2312_v42  ;;  %v1200_v25 = vand.u32 65535, %v1196_v23  ;;  %v1201_v37 = vshrl.u32 %v1196_v23, 16 }
 0x172   :  { %v2362_v21 = vsel %vm689_vm2, %v2540_v1, %v1974_v32  ;;  %v1225_v48 = vmul.u32 %v1223_v40, %v1198_v41  ;;  %v978_v11 = vadd.f32 0.008332121, %v977_v45  ;;  %vm1098_vm7 = vcmp.lt.s32.totalorder %v1097_v43, 0 }
 0x173   :  { %v1099_v5 = vsub.s32 0, %v1097_v43  ;;  %v1199_v61 = vshrl.u32 %v2320_v57, 16  ;;  %v673_v22 = vmul.f32 %v672_v62, %v2123_v4  ;;  %v2367_v44 = vadd.f32 -0.4999988, %v818_v30 }
 0x174   :  { %v827_v59 = vmul.f32 %v826_v39, %v2197_v26  ;;  %v1203_v32 = vmul.u32 %v1201_v37, %v1198_v41  ;;  %v1165_v31 = vshrl.u32 %v1353_v33, %v2257_v55  ;;  %v971_v2 = vadd.f32 0.041655596, %v970_v19 }
 0x175   :  { %v1100_v36 = vsel %vm1098_vm7, %v1099_v5, %v1097_v43  ;;  %v1204_v28 = vmul.u32 %v1200_v25, %v1199_v61  ;;  %v1226_v53 = vmul.u32 %v1222_v7, %v1199_v61  ;;  %v1089_v47 = vadd.s32 %v2263_v34, %v2261_v8 }
 0x176   :  { %v1101_v56 = vclz %v1100_v36  ;;  %v1228_v17 = vshll.u32 %v1225_v48, 16  ;;  %v979_v3 = vmul.f32 %v978_v11, %v2312_v42  ;;  %v1186_v62 = vsel %vm1184_vm15, %v1174_v24, 2102212464 }
 0x177   :  { %v1202_v45 = vmul.u32 %v1200_v25, %v1198_v41  ;;  %v1206_v63 = vshll.u32 %v1203_v32, 16  ;;  %v1205_v39 = vmul.u32 %v1201_v37, %v1199_v61  ;;  %v1224_v23 = vmul.u32 %v1222_v7, %v1198_v41 }
 0x178   :  { %v1335_v30 = vadd.s32 4294967294, %v1101_v56  ;;  %v1227_v1 = vmul.u32 %v1223_v40, %v1199_v61  ;;  %v1208_v33 = vshll.u32 %v1204_v28, 16  ;;  %v1230_v19 = vshll.u32 %v1226_v53, 16 }
 0x179   :  { %vm1210_vm2 = vc.u32 %v1202_v45, %v1206_v63  ;;  %v1212_v55 = vadd.s32 %v1206_v63, %v1202_v45  ;;  %vm1232_vm6 = vc.u32 %v1224_v23, %v1228_v17  ;;  %v1234_v34 = vadd.s32 %v1228_v17, %v1224_v23 }
 0x17a   :  { %vm1336_vm4 = vcmp.lt.s32.totalorder %v1335_v30, 0  ;;  %v1211_v8 = vsel %vm1210_vm2, 1, %v1352_v0  ;;  %v1233_v24 = vsel %vm1232_vm6, 1, %v1352_v0  ;;  %v980_v25 = vadd.f32 -0.16666654, %v979_v3 }
 0x17b   :  { %v1104_v5 = vsel %vm1336_vm4, 0, %v1335_v30  ;;  %v1213_v11 = vadd.s32 %v1211_v8, %v1205_v39  ;;  %vm1214_vm8 = vc.u32 %v1212_v55, %v1208_v33  ;;  %v1207_v40 = vshrl.u32 %v1203_v32, 16 }
 0x17c   :  { %v1105_v36 = vsub.s32 32, %v1104_v5  ;;  %v1109_v56 = vsub.s32 4294967266, %v1104_v5  ;;  %v1215_v41 = vsel %vm1214_vm8, 1, %v1352_v0  ;;  %v1235_v37 = vadd.s32 %v1233_v24, %v1227_v1 }
 0x17d   :  { %v1217_v7 = vadd.s32 %v1215_v41, %v1213_v11  ;;  %vm1236_vm1 = vc.u32 %v1234_v34, %v1230_v19  ;;  %v1106_v61 = vshll.u32 %v1097_v43, %v1104_v5  ;;  %v1209_v17 = vshrl.u32 %v1204_v28, 16 }
 0x17e   :  { %v1107_v45 = vshrl.u32 %v1089_v47, %v1105_v36  ;;  %v1110_v63 = vadd.s32 127, %v1109_v56  ;;  %v1237_v49 = vsel %vm1236_vm1, 1, %v1352_v0  ;;  %v1229_v39 = vshrl.u32 %v1225_v48, 16 }
 0x17f   :  { %v1218_v30 = vadd.s32 %v1217_v7, %v1207_v40  ;;  %v1239_v23 = vadd.s32 %v1237_v49, %v1235_v37  ;;  %v1185_v3 = vsel %vm1181_vm14, %v1165_v31, %v2280_v16  ;;  %v1187_v32 = vsel %vm1183_vm0, %v2284_v46, %v1186_v62 }
 0x180   :  { %v1108_v33 = vor.u32 %v1107_v45, %v1106_v61  ;;  %v1111_v55 = vshll.u32 %v1110_v63, 23  ;;  %v972_v43 = vmul.f32 %v971_v2, %v2312_v42  ;;  %v1231_v1 = vshrl.u32 %v1226_v53, 16 }
 0x181   :  { %v2388_v47 = vadd.s32 %v1218_v30, %v1209_v17  ;;  %v1240_v0 = vadd.s32 %v1239_v23, %v1229_v39  ;;  %v666_v48 = vmul.f32 %v2355_v38, %v2123_v4  ;;  %v674_v49 = vadd.f32 1.0, %v673_v22 }
 0x182   :  { %v1112_v28 = vor.u32 4788187, %v1111_v55  ;;  %v2392_v8 = vadd.s32 %v1234_v34, %v1230_v19  ;;  %v965_v5 = vsub.s32 4, %v2144_v52  ;;  %v981_v16 = vmul.f32 %v980_v25, %v2312_v42 }
 0x183   :  { %v1188_v46 = vsel %vm1182_vm3, %v1185_v3, %v1187_v32  ;;  %v1241_v31 = vadd.s32 %v1240_v0, %v1231_v1  ;;  %v828_v2 = vadd.f32 1.0, %v827_v59  ;;  %v1115_v11 = vcvt.s32.f32 %v1108_v33 }
 0x184   :  { %v1113_v62 = vand.u32 2147483647, %v1112_v28  ;;  %vm1244_vm10 = vc.u32 %v2388_v47, %v2392_v8  ;;  %v814_v4 = vsel %vm2115_vm13, 0, %v2362_v21  ;;  %v820_v38 = vmul.f32 %v2367_v44, %v2197_v26 }
 0x185   :  { %v973_v22 = vadd.f32 -0.4999988, %v972_v43  ;;  %v1245_v53 = vadd.s32 1, %v1241_v31  ;;  %v667_v19 = vadd.f32 1.0, %v666_v48  ;;  %vm679_vm11 = vcmp.eq.s32.totalorder %v2340_v10, 0 }
 0x186   :  { %v1116_v18 = vmul.f32 %v1115_v11, %v1113_v62  ;;  %v1242_v59 = vmul.u32 %v2320_v57, %v1188_v46  ;;  %v675_v34 = vmul.f32 %v674_v49, %v2095_v50  ;;  %v966_v24 = vsel %vm843_vm5, %v965_v5, %v2144_v52 }
 0x187   :  { %v982_v25 = vadd.f32 1.0, %v981_v16  ;;  %v1246_v12 = vsel %vm1244_vm10, %v1245_v53, %v1241_v31  ;;  %v829_v21 = vmul.f32 %v828_v2, %v2177_v13  ;;  %v831_v36 = vand.u32 3, %v814_v4 }
 0x188   :  { %v1117_v26 = vxor.u32 2147483648, %v1116_v18  ;;  %v1247_v44 = vadd.s32 %v1246_v12, %v1242_v59  ;;  %vm682_vm13 = vcmp.eq.s32.totalorder %v2340_v10, 2  ;;  %v821_v56 = vadd.f32 1.0, %v820_v38 }
 0x189   :  { %v974_v41 = vmul.f32 %v973_v22, %v2312_v42  ;;  %vm997_vm12 = vcmp.lt.s32.totalorder %v1947_v58, 0  ;;  %vm522_vm14 = vweird.f32 %v1412_v15  ;;  %vm678_vm15 = vcmp.lt.s32.totalorder %v2340_v10, 2 }
 0x18a   :  { %v968_v50 = vsel %vm2244_vm9, 0, %v966_v24  ;;  %v2541_v52 = vand.u32 2147483647, %v1947_v58  ;;  %v1118_v57 = vsel %vm997_vm12, %v1117_v26, %v1116_v18  ;;  %v1248_v40 = vadd.s32 536870912, %v1247_v44 }
 0x18b   :  { %v680_v42 = vxor.u32 2147483648, %v675_v34  ;;  %v683_v7 = vxor.u32 2147483648, %v667_v19  ;;  %v983_v37 = vmul.f32 %v982_v25, %v2296_v20  ;;  %vm832_vm0 = vcmp.lt.s32.totalorder %v831_v36, 2 }
 0x18c   :  { %vm2421_vm5 = vcmp.le.f32.partialorder %v2541_v52, 0.7853982  ;;  %v834_v9 = vxor.u32 2147483648, %v829_v21  ;;  %v2431_v63 = vshrl.u32 %v1248_v40, 30  ;;  %v837_v17 = vxor.u32 2147483648, %v821_v56 }
 0x18d   :  { %v1121_v61 = vsel %vm2421_vm5, %v1947_v58, %v1118_v57  ;;  %v975_v30 = vadd.f32 1.0, %v974_v41  ;;  %v985_v39 = vand.u32 3, %v968_v50  ;;  %v1119_v23 = vsub.s32 4, %v2324_v27 }
 0x18e   :  { %v1123_v45 = vmul.f32 %v1121_v61, %v1121_v61  ;;  %vm676_vm9 = vweird.f32 %v1637_v51  ;;  %vm833_vm3 = vcmp.eq.s32.totalorder %v831_v36, 0  ;;  %v1250_v20 = vshll.u32 %v2431_v63, 30 }
 0x18f   :  { %v681_v3 = vsel %vm679_vm11, %v667_v19, %v680_v42  ;;  %v684_v32 = vsel %vm682_vm13, %v683_v7, %v675_v34  ;;  %vm836_vm7 = vcmp.eq.s32.totalorder %v831_v36, 2  ;;  %v988_v43 = vxor.u32 2147483648, %v983_v37 }
 0x190   :  { %v1124_v33 = vmul.f32 -0.001358992, %v1123_v45  ;;  %v1131_v55 = vmul.f32 -0.00019511016, %v1123_v45  ;;  %v835_v1 = vsel %vm833_vm3, %v821_v56, %v834_v9  ;;  %v1251_v49 = vsub.s32 %v1247_v44, %v1250_v20 }
 0x191   :  { %v838_v28 = vsel %vm836_vm7, %v837_v17, %v829_v21  ;;  %vm987_vm2 = vcmp.eq.s32.totalorder %v985_v39, 0  ;;  %v991_v5 = vxor.u32 2147483648, %v975_v30  ;;  %v1120_v16 = vsel %vm997_vm12, %v1119_v23, %v2324_v27 }
 0x192   :  { %v1125_v0 = vadd.f32 0.041655596, %v1124_v33  ;;  %v1132_v48 = vadd.f32 0.008332121, %v1131_v55  ;;  %vm1252_vm4 = vcmp.lt.s32.totalorder %v1251_v49, 0  ;;  %v1253_v2 = vsub.s32 0, %v1251_v49 }
 0x193   :  { %v532_v62 = vsel %vm522_vm14, nan, %v2347_v35  ;;  %v685_v11 = vsel %vm678_vm15, %v681_v3, %v684_v32  ;;  %v839_v4 = vsel %vm832_vm0, %v835_v1, %v838_v28  ;;  %v989_v38 = vsel %vm987_vm2, %v975_v30, %v988_v43 }
 0x194   :  { %v1126_v46 = vmul.f32 %v1125_v0, %v1123_v45  ;;  %v1133_v31 = vmul.f32 %v1132_v48, %v1123_v45  ;;  %vm990_vm6 = vcmp.eq.s32.totalorder %v985_v39, 2  ;;  %v1254_v19 = vsel %vm1252_vm4, %v1253_v2, %v1251_v49 }
 0x195   :  { %vm986_vm8 = vcmp.lt.s32.totalorder %v985_v39, 2  ;;  %v992_v27 = vsel %vm990_vm6, %v991_v5, %v983_v37  ;;  %v1122_v18 = vsel %vm2421_vm5, 0, %v1120_v16  ;;  %v1255_v59 = vclz %v1254_v19 }
 0x196   :  { %v1127_v22 = vadd.f32 -0.4999988, %v1126_v46  ;;  %v1134_v53 = vadd.f32 -0.16666654, %v1133_v31  ;;  %v993_v34 = vsel %vm986_vm8, %v989_v38, %v992_v27  ;;  %vm1303_vm1 = vcmask 408576  }
 0x197   :  { %v686_v10 = vsel %vm676_vm9, nan, %v685_v11  ;;  %vm830_vm10 = vweird.f32 %v1685_v29  ;;  %vm984_vm11 = vweird.f32 %v1842_v60  ;;  %v1338_v35 = vadd.s32 4294967294, %v1255_v59  ;;  %1304 = vst.msk [vmem:[%s2509_s2] sm:$0xff] %vm1303_vm1, %v2102_v54 }
 0x198   :  { %v1128_v24 = vmul.f32 %v1127_v22, %v1123_v45  ;;  %v1135_v15 = vmul.f32 %v1134_v53, %v1123_v45  ;;  %v840_v25 = vsel %vm830_vm10, nan, %v839_v4  ;;  %v1139_v36 = vand.u32 3, %v1122_v18  ;;  %1305 = vst.msk [vmem:[%s2509_s2 + $0x8] sm:$0xff] %vm1303_vm1, %v2148_v14 }
 0x199   :  { %v994_v51 = vsel %vm984_vm11, nan, %v993_v34  ;;  %vm1339_vm13 = vcmp.lt.s32.totalorder %v1338_v35, 0  ;;  %1306 = vst.msk [vmem:[%s2509_s2 + $0x10] sm:$0xff] %vm1303_vm1, %v532_v62  ;;  %v1243_v26 = vadd.s32 %v2392_v8, %v2388_v47  ;;  %vm1138_vm5 = vweird.f32 %v1947_v58 }
 0x19a   :  { %v1129_v12 = vadd.f32 1.0, %v1128_v24  ;;  %v1136_v21 = vadd.f32 1.0, %v1135_v15  ;;  %v1258_v54 = vsel %vm1339_vm13, 0, %v1338_v35  ;;  %1307 = vst.msk [vmem:[%s2509_s2 + $0x18] sm:$0xff] %vm1303_vm1, %v686_v10  ;;  %vm1141_vm12 = vcmp.eq.s32.totalorder %v1139_v36, 0 }
 0x19b   :  { %v1259_v44 = vsub.s32 32, %v1258_v54  ;;  %v1263_v14 = vsub.s32 4294967266, %v1258_v54  ;;  %1308 = vst.msk [vmem:[%s2509_s2 + $0x20] sm:$0xff] %vm1303_vm1, %v840_v25  ;;  %vm1144_vm14 = vcmp.eq.s32.totalorder %v1139_v36, 2  ;;  %v1260_v41 = vshll.u32 %v1251_v49, %v1258_v54 }
 0x19c   :  { %v1137_v29 = vmul.f32 %v1136_v21, %v1121_v61  ;;  %v1145_v60 = vxor.u32 2147483648, %v1129_v12  ;;  %1309 = vst.msk [vmem:[%s2509_s2 + $0x28] sm:$0xff] %vm1303_vm1, %v994_v51  ;;  %vm1140_vm15 = vcmp.lt.s32.totalorder %v1139_v36, 2  ;;  %vm1151_vm0 = vcmp.lt.s32.totalorder %v1960_v6, 0 }
 0x19d   :  { %v1261_v50 = vshrl.u32 %v1243_v26, %v1259_v44  ;;  %v1264_v52 = vadd.s32 127, %v1263_v14  ;;  %v2544_v17 = vand.u32 2147483647, %v1960_v6  ;;  %v1273_v20 = vsub.s32 4, %v2431_v63 }
 0x19e   :  { %v1142_v56 = vxor.u32 2147483648, %v1137_v29  ;;  %v1146_v8 = vsel %vm1144_vm14, %v1145_v60, %v1137_v29  ;;  %vm1292_vm4 = vweird.f32 %v1960_v6 }
 0x19f   :  { %v1262_v57 = vor.u32 %v1261_v50, %v1260_v41  ;;  %v1265_v40 = vshll.u32 %v1264_v52, 23  ;;  %vm2491_vm9 = vcmp.le.f32.partialorder %v2544_v17, 0.7853982  ;;  %v1274_v0 = vsel %vm1151_vm0, %v1273_v20, %v2431_v63 }
 0x1a0   :  { %v1143_v47 = vsel %vm1141_vm12, %v1129_v12, %v1142_v56  ;;  %v1276_v28 = vsel %vm2491_vm9, 0, %v1274_v0 }
 0x1a1   :  { %v1147_v13 = vsel %vm1140_vm15, %v1143_v47, %v1146_v8  ;;  %v1266_v7 = vor.u32 4788187, %v1265_v40  ;;  %v1269_v61 = vcvt.s32.f32 %v1262_v57  ;;  %v1293_v2 = vand.u32 3, %v1276_v28 }
 0x1a2   :  { %v1148_v42 = vsel %vm1138_vm5, nan, %v1147_v13 }
 0x1a3   :  { %1310 = vst.msk [vmem:[%s2509_s2 + $0x30] sm:$0xff] %vm1303_vm1, %v1148_v42  ;;  %v1267_v37 = vand.u32 2147483647, %v1266_v7  ;;  %vm1295_vm3 = vcmp.eq.s32.totalorder %v1293_v2, 0  ;;  %vm1298_vm7 = vcmp.eq.s32.totalorder %v1293_v2, 2  ;;  %vm1294_vm2 = vcmp.lt.s32.totalorder %v1293_v2, 2 }
 0x1a5   :  { %v1270_v9 = vmul.f32 %v1269_v61, %v1267_v37 }
 0x1a7   :  { %v1271_v45 = vxor.u32 2147483648, %v1270_v9 }
 0x1a9   :  { %v1272_v30 = vsel %vm1151_vm0, %v1271_v45, %v1270_v9 }
 0x1aa   :  { %v1275_v39 = vsel %vm2491_vm9, %v1960_v6, %v1272_v30 }
 0x1ab   :  { %v1277_v23 = vmul.f32 %v1275_v39, %v1275_v39 }
 0x1ad   :  { %v1278_v33 = vmul.f32 -0.001358992, %v1277_v23  ;;  %v1285_v55 = vmul.f32 -0.00019511016, %v1277_v23 }
 0x1af   :  { %v1279_v3 = vadd.f32 0.041655596, %v1278_v33  ;;  %v1286_v32 = vadd.f32 0.008332121, %v1285_v55 }
 0x1b1   :  { %v1280_v43 = vmul.f32 %v1279_v3, %v1277_v23  ;;  %v1287_v1 = vmul.f32 %v1286_v32, %v1277_v23 }
 0x1b3   :  { %v1281_v48 = vadd.f32 -0.4999988, %v1280_v43  ;;  %v1288_v49 = vadd.f32 -0.16666654, %v1287_v1 }
 0x1b5   :  { %v1282_v5 = vmul.f32 %v1281_v48, %v1277_v23  ;;  %v1289_v16 = vmul.f32 %v1288_v49, %v1277_v23 }
 0x1b7   :  { %v1283_v46 = vadd.f32 1.0, %v1282_v5  ;;  %v1290_v31 = vadd.f32 1.0, %v1289_v16 }
 0x1b9   :  { %v1291_v62 = vmul.f32 %v1290_v31, %v1275_v39  ;;  %v1299_v11 = vxor.u32 2147483648, %v1283_v46 }
 0x1bb   :  { %v1296_v4 = vxor.u32 2147483648, %v1291_v62  ;;  %v1300_v22 = vsel %vm1298_vm7, %v1299_v11, %v1291_v62 }
 0x1bd   :  { %v1297_v38 = vsel %vm1295_vm3, %v1283_v46, %v1296_v4 }
 0x1be   :  { %v1301_v63 = vsel %vm1294_vm2, %v1297_v38, %v1300_v22 }
 0x1bf   :  { %v1302_v53 = vsel %vm1292_vm4, nan, %v1301_v63 }
 0x1c0   :  { %1311 = vst.msk [vmem:[%s2509_s2 + $0x38] sm:$0xff] %vm1303_vm1, %v1302_v53 }

</bundles_post_ra>
